<compile_context>
chip_gen: v7x
topology: tpu7x:2x2x1
jax: 0.10.0
libtpu: 0.0.40
codegen_flags: <defaults>
</compile_context>

<pallas_src>
import functools

import jax
import jax.numpy as jnp
from jax import lax
from jax.experimental import pallas as pl
from jax.experimental.pallas import tpu as pltpu


LANE = 128      # pad F / H to multiples of this (prefer 256 on v6e/v7x)
SUBLANE = 8     # pad batch N to multiples of this


# ----------------------------------------------------------------------------
# small helpers
# ----------------------------------------------------------------------------
def _pad_axis(x, axis, mult):
    pad = (-x.shape[axis]) % mult
    if pad == 0:
        return x
    widths = [(0, 0)] * x.ndim
    widths[axis] = (0, pad)
    return jnp.pad(x, widths)


def _largest_divisor(n, cap, mult=1):
    for c in range(min(cap, n), 0, -1):
        if n % c == 0 and c % mult == 0:
            return c
    return n


# ----------------------------------------------------------------------------
# 1) Input projection: gx[d] = x @ W_ih[d] + b_ih[d]  for both directions.
#    One big parallel GEMM; grid = (direction, row_blocks).
# ----------------------------------------------------------------------------
def input_proj_kernel(x_ref, wih_ref, bih_ref, gx_ref):
    gx_ref[...] = (
        jnp.dot(x_ref[...], wih_ref[...], preferred_element_type=jnp.float32)
        + bih_ref[...]
    )


def run_input_proj(x_rows, wih, bih):
    rows, Fp = x_rows.shape
    G = wih.shape[-1]                      # 3 * H_pad
    rb = _largest_divisor(rows, 512, mult=SUBLANE)
    return pl.pallas_call(
        input_proj_kernel,
        out_shape=jax.ShapeDtypeStruct((2, rows, G), jnp.float32),
        grid_spec=pltpu.PrefetchScalarGridSpec(
            num_scalar_prefetch=0,
            grid=(2, rows // rb),
            in_specs=[
                pl.BlockSpec((rb, Fp), lambda d, r: (r, 0)),
                pl.BlockSpec((None, Fp, G), lambda d, r: (d, 0, 0)),
                pl.BlockSpec((None, 1, G), lambda d, r: (d, 0, 0)),
            ],
            out_specs=pl.BlockSpec((None, rb, G), lambda d, r: (d, r, 0)),
        ),
        compiler_params=pltpu.CompilerParams(
            dimension_semantics=("parallel", "parallel")),
    )(x_rows, wih, bih)


# ----------------------------------------------------------------------------
# 2) Bidirectional GRU recurrence.  grid = (direction=2 "parallel",
#    time_blocks "arbitrary").  TB timesteps per grid step, hidden state
#    carried in f32 VMEM scratch.  One fused (H,3H) GEMM per step.
# ----------------------------------------------------------------------------
def gru_recurrence_kernel(gx_ref, whh_ref, bhh_ref, out_ref, h_scratch,
                          *, tb, hp):
    d = pl.program_id(0)                   # 0 = forward, 1 = backward

    @pl.when(pl.program_id(1) == 0)
    def _():
        h_scratch[...] = jnp.zeros_like(h_scratch)

    whh = whh_ref[...]                     # (Hp, 3Hp) bf16
    bhh = bhh_ref[...]                     # (1, 3Hp) f32

    def step(j, h):
        # forward: local = j ; backward: local = tb - 1 - j (pure arithmetic)
        local = j + d * (tb - 1 - 2 * j)
        gx = gx_ref[local]                 # (Np, 3Hp) f32, precomputed
        gh = jnp.dot(h.astype(jnp.bfloat16), whh,
                     preferred_element_type=jnp.float32) + bhh
        # PyTorch GRU, gate order [r, z, n]:
        r = jax.nn.sigmoid(gx[:, :hp] + gh[:, :hp])
        z = jax.nn.sigmoid(gx[:, hp:2 * hp] + gh[:, hp:2 * hp])
        n = jnp.tanh(gx[:, 2 * hp:] + r * gh[:, 2 * hp:])
        h_new = n + z * (h - n)            # == (1 - z) * n + z * h
        out_ref[local] = h_new.astype(out_ref.dtype)
        return h_new

    h_scratch[...] = lax.fori_loop(0, tb, step, h_scratch[...], unroll=True)


def run_gru_recurrence(gx, whh, bhh, *, h_pad):
    _, T, Np, G = gx.shape
    tb = _largest_divisor(T, 16)
    nb = T // tb
    kernel = functools.partial(gru_recurrence_kernel, tb=tb, hp=h_pad)
    return pl.pallas_call(
        kernel,
        out_shape=jax.ShapeDtypeStruct((2, T, Np, h_pad), jnp.bfloat16),
        grid_spec=pltpu.PrefetchScalarGridSpec(
            num_scalar_prefetch=0,
            grid=(2, nb),
            in_specs=[
                pl.BlockSpec(
                    (None, tb, Np, G),
                    lambda d, t: (d, t + d * (nb - 1 - 2 * t), 0, 0)),
                pl.BlockSpec((None, h_pad, G), lambda d, t: (d, 0, 0)),
                pl.BlockSpec((None, 1, G), lambda d, t: (d, 0, 0)),
            ],
            out_specs=pl.BlockSpec(
                (None, tb, Np, h_pad),
                lambda d, t: (d, t + d * (nb - 1 - 2 * t), 0, 0)),
            scratch_shapes=[pltpu.VMEM((Np, h_pad), jnp.float32)],
        ),
        compiler_params=pltpu.CompilerParams(
            dimension_semantics=("parallel", "arbitrary")),
    )(gx, whh, bhh)


# ----------------------------------------------------------------------------
# 3) Final Linear over flattened (T*N) rows:
#    out = h_fwd @ Wf + h_bwd @ Wb + b
# ----------------------------------------------------------------------------
def fc_kernel(hf_ref, hb_ref, wf_ref, wb_ref, b_ref, out_ref):
    out_ref[...] = (
        jnp.dot(hf_ref[...], wf_ref[...], preferred_element_type=jnp.float32)
        + jnp.dot(hb_ref[...], wb_ref[...], preferred_element_type=jnp.float32)
        + b_ref[...]
    )


def run_fc(h_rows, wf, wb, b):
    _, rows, Hp = h_rows.shape
    Fp = wf.shape[-1]
    rb = _largest_divisor(rows, 512, mult=SUBLANE)
    return pl.pallas_call(
        fc_kernel,
        out_shape=jax.ShapeDtypeStruct((rows, Fp), jnp.float32),
        grid_spec=pltpu.PrefetchScalarGridSpec(
            num_scalar_prefetch=0,
            grid=(rows // rb,),
            in_specs=[
                pl.BlockSpec((None, rb, Hp), lambda r: (0, r, 0)),
                pl.BlockSpec((None, rb, Hp), lambda r: (1, r, 0)),
                pl.BlockSpec((Hp, Fp), lambda r: (0, 0)),
                pl.BlockSpec((Hp, Fp), lambda r: (0, 0)),
                pl.BlockSpec((1, Fp), lambda r: (0, 0)),
            ],
            out_specs=pl.BlockSpec((rb, Fp), lambda r: (r, 0)),
        ),
        compiler_params=pltpu.CompilerParams(
            dimension_semantics=("parallel",)),
    )(h_rows, h_rows, wf, wb, b)


# ----------------------------------------------------------------------------
# Parameter init (PyTorch layout) + conversion to kernel layout
# (gate-fused, padded, bf16 weights / f32 biases).
# ----------------------------------------------------------------------------
def init_torch_params(key, num_features, hidden_size):
    F, H = num_features, hidden_size
    k_gru = 1.0 / jnp.sqrt(H)
    k_fc = 1.0 / jnp.sqrt(2 * H)

    def u(k, shape, scale):
        return jax.random.uniform(k, shape, jnp.float32, -scale, scale)

    keys = jax.random.split(key, 10)
    p = {}
    for d, name in enumerate(["fwd", "bwd"]):
        p[name] = dict(
            w_ih=u(keys[4 * d + 0], (3 * H, F), k_gru),
            w_hh=u(keys[4 * d + 1], (3 * H, H), k_gru),
            b_ih=u(keys[4 * d + 2], (3 * H,), k_gru),
            b_hh=u(keys[4 * d + 3], (3 * H,), k_gru),
        )
    p["fc_w"] = u(keys[8], (F, 2 * H), k_fc)
    p["fc_b"] = u(keys[9], (F,), k_fc)
    return p


def make_kernel_params(tp, num_features, hidden_size, *, lane=LANE):
    F, H = num_features, hidden_size
    Fp = ((F + lane - 1) // lane) * lane
    Hp = ((H + lane - 1) // lane) * lane

    def fuse_w(w, in_dim, in_pad):
        # torch (3H, in_dim) -> kernel (in_pad, 3*Hp): per-gate transpose+pad.
        cols = []
        for g in range(3):
            wg = w[g * H:(g + 1) * H, :].T                         # (in, H)
            cols.append(jnp.pad(wg, ((0, in_pad - in_dim), (0, Hp - H))))
        return jnp.concatenate(cols, axis=1)                       # (in, 3Hp)

    def fuse_b(b):
        cols = [jnp.pad(b[g * H:(g + 1) * H], (0, Hp - H)) for g in range(3)]
        return jnp.concatenate(cols)[None, :]                      # (1, 3Hp)

    wih = jnp.stack([fuse_w(tp[n]["w_ih"], F, Fp) for n in ("fwd", "bwd")])
    whh = jnp.stack([fuse_w(tp[n]["w_hh"], H, Hp) for n in ("fwd", "bwd")])
    bih = jnp.stack([fuse_b(tp[n]["b_ih"]) for n in ("fwd", "bwd")])
    bhh = jnp.stack([fuse_b(tp[n]["b_hh"]) for n in ("fwd", "bwd")])

    wf = jnp.pad(tp["fc_w"][:, :H].T, ((0, Hp - H), (0, Fp - F)))
    wb = jnp.pad(tp["fc_w"][:, H:].T, ((0, Hp - H), (0, Fp - F)))
    fcb = jnp.pad(tp["fc_b"], (0, Fp - F))[None, :]

    return dict(
        wih=wih.astype(jnp.bfloat16),   # (2, Fp, 3Hp)
        whh=whh.astype(jnp.bfloat16),   # (2, Hp, 3Hp)
        bih=bih,                        # (2, 1, 3Hp) f32
        bhh=bhh,                        # (2, 1, 3Hp) f32
        wf=wf.astype(jnp.bfloat16),     # (Hp, Fp)
        wb=wb.astype(jnp.bfloat16),     # (Hp, Fp)
        fcb=fcb,                        # (1, Fp) f32
    )


# ----------------------------------------------------------------------------
# Forward pass (matches GRUEncoder.forward: (T, N, F) -> (T, N, F)).
# ----------------------------------------------------------------------------
@jax.jit
def gru_encoder_forward(x, params):
    T, N, F = x.shape
    Hp = params["whh"].shape[1]
    Fp = params["wih"].shape[1]
    G = params["wih"].shape[2]            # 3 * Hp

    xp = _pad_axis(_pad_axis(x, 1, SUBLANE), 2, LANE)
    Np = xp.shape[1]
    assert xp.shape[2] == Fp
    x_rows = xp.reshape(T * Np, Fp).astype(jnp.bfloat16)

    # 1) hoisted input projection (both directions, all timesteps)
    gx = run_input_proj(x_rows, params["wih"], params["bih"])
    gx = gx.reshape(2, T, Np, G)

    # 2) fused bidirectional recurrence
    h = run_gru_recurrence(gx, params["whh"], params["bhh"], h_pad=Hp)

    # 3) output projection over flat rows
    h_rows = h.reshape(2, T * Np, Hp)
    out = run_fc(h_rows, params["wf"], params["wb"], params["fcb"])
    return out.reshape(T, Np, Fp)[:, :N, :F]


# ----------------------------------------------------------------------------
# Pure-JAX reference (lax.scan) mirroring the kernel numerics.
# ----------------------------------------------------------------------------
def reference_forward(x, params):
    T, N, F = x.shape
    Hp = params["whh"].shape[1]
    xp = _pad_axis(_pad_axis(x, 1, SUBLANE), 2, LANE)
    Np = xp.shape[1]
    xb = xp.astype(jnp.bfloat16)

    def gru_dir(d, reverse):
        gx = (jnp.einsum("tnf,fg->tng", xb, params["wih"][d],
                         preferred_element_type=jnp.float32)
              + params["bih"][d])
        whh, bhh = params["whh"][d], params["bhh"][d]

        def step(h, gx_t):
            gh = jnp.dot(h.astype(jnp.bfloat16), whh,
                         preferred_element_type=jnp.float32) + bhh
            r = jax.nn.sigmoid(gx_t[:, :Hp] + gh[:, :Hp])
            z = jax.nn.sigmoid(gx_t[:, Hp:2 * Hp] + gh[:, Hp:2 * Hp])
            n = jnp.tanh(gx_t[:, 2 * Hp:] + r * gh[:, 2 * Hp:])
            h_new = n + z * (h - n)
            return h_new, h_new.astype(jnp.bfloat16)

        seq = gx[::-1] if reverse else gx
        _, hs = lax.scan(step, jnp.zeros((Np, Hp), jnp.float32), seq)
        return hs[::-1] if reverse else hs

    hf = gru_dir(0, reverse=False)
    hb = gru_dir(1, reverse=True)
    out = (jnp.einsum("tnh,hf->tnf", hf, params["wf"],
                      preferred_element_type=jnp.float32)
           + jnp.einsum("tnh,hf->tnf", hb, params["wb"],
                        preferred_element_type=jnp.float32)
           + params["fcb"])
    return out[:, :N, :F]


if __name__ == "__main__":
    T, N, F, H = 8, 2, 16, 32

    key = jax.random.PRNGKey(0)
    k_x, k_p = jax.random.split(key)
    x = jax.random.normal(k_x, (T, N, F), jnp.float32)

    torch_params = init_torch_params(k_p, num_features=F, hidden_size=H)
    params = make_kernel_params(torch_params, num_features=F, hidden_size=H)

    out = gru_encoder_forward(x, params)
    out = jax.block_until_ready(out)
    assert out.shape == (T, N, F), out.shape

    ref = reference_forward(x, params)
    err = float(jnp.max(jnp.abs(out - ref)))
    assert err < 2e-3, err

    print("KERNEL_OK")
</pallas_src>

<mosaic_0001>
module attributes {stable_mosaic.version = 11 : i64} {
  func.func @gru_recurrence_kernel(%arg0: i32, %arg1: i32, %arg2: memref<1x8x8x384xf32, #tpu.memory_space<vmem>>, %arg3: memref<1x128x384xbf16, #tpu.memory_space<vmem>>, %arg4: memref<1x1x384xf32, #tpu.memory_space<vmem>>, %arg5: memref<1x8x8x128xbf16, #tpu.memory_space<vmem>>, %arg6: memref<8x128xf32, #tpu.memory_space<vmem>>) attributes {dimension_semantics = [#tpu.dimension_semantics<parallel>, #tpu.dimension_semantics<arbitrary>], iteration_bounds = array<i64: 2, 1>, scalar_prefetch = 0 : i64, scratch_operands = 1 : i64, tpu.core_type = #tpu.core_type<tc>, window_params = [{transform_indices = @transform_0, window_bounds = array<i64: 1, 8, 8, 384>}, {transform_indices = @transform_1, window_bounds = array<i64: 1, 128, 384>}, {transform_indices = @transform_2, window_bounds = array<i64: 1, 1, 384>}, {transform_indices = @transform_3, window_bounds = array<i64: 1, 8, 8, 128>}]} {
    %c0_i32 = arith.constant 0 : i32
    %0 = arith.cmpi eq, %arg1, %c0_i32 : i32
    %1 = arith.extui %0 : i1 to i32
    %c0_i32_0 = arith.constant 0 : i32
    %2 = arith.cmpi ne, %1, %c0_i32_0 : i32
    scf.if %2 {
      %cst_98 = arith.constant 0.000000e+00 : f32
      %329 = vector.broadcast %cst_98 : f32 to vector<8x128xf32>
      %c0_99 = arith.constant 0 : index
      %c0_100 = arith.constant 0 : index
      %330 = vector.load %arg6[%c0_99, %c0_100] : memref<8x128xf32, #tpu.memory_space<vmem>>, vector<8x128xf32>
      tpu.vector_store %arg6[%c0_99, %c0_100], %329 {strides = array<i32>} : memref<8x128xf32, #tpu.memory_space<vmem>>, vector<8x128xf32>,
    } else {
    }
    %c0 = arith.constant 0 : index
    %c0_1 = arith.constant 0 : index
    %c0_2 = arith.constant 0 : index
    %3 = vector.load %arg3[%c0, %c0_1, %c0_2] : memref<1x128x384xbf16, #tpu.memory_space<vmem>>, vector<1x128x384xbf16>
    %4 = vector.shape_cast %3 : vector<1x128x384xbf16> to vector<128x384xbf16>
    %c0_3 = arith.constant 0 : index
    %c0_4 = arith.constant 0 : index
    %c0_5 = arith.constant 0 : index
    %5 = vector.load %arg4[%c0_3, %c0_4, %c0_5] : memref<1x1x384xf32, #tpu.memory_space<vmem>>, vector<1x1x384xf32>
    %6 = vector.shape_cast %5 : vector<1x1x384xf32> to vector<1x384xf32>
    %c0_6 = arith.constant 0 : index
    %c0_7 = arith.constant 0 : index
    %7 = vector.load %arg6[%c0_6, %c0_7] : memref<8x128xf32, #tpu.memory_space<vmem>>, vector<8x128xf32>
    %c0_i32_8 = arith.constant 0 : i32
    %c2_i32 = arith.constant 2 : i32
    %8 = arith.muli %c2_i32, %c0_i32_8 : i32
    %c7_i32 = arith.constant 7 : i32
    %9 = arith.subi %c7_i32, %8 : i32
    %10 = arith.muli %arg0, %9 : i32
    %11 = arith.addi %c0_i32_8, %10 : i32
    %c0_9 = arith.constant 0 : index
    %12 = arith.index_cast %11 : i32 to index
    %c0_10 = arith.constant 0 : index
    %c0_11 = arith.constant 0 : index
    %13 = vector.load %arg2[%c0_9, %12, %c0_10, %c0_11] : memref<1x8x8x384xf32, #tpu.memory_space<vmem>>, vector<1x1x8x384xf32>
    %14 = vector.shape_cast %13 : vector<1x1x8x384xf32> to vector<8x384xf32>
    %15 = arith.truncf %7 : vector<8x128xf32> to vector<8x128xbf16>
    %cst = arith.constant dense<0.000000e+00> : vector<8x384xf32>
    %16 = tpu.matmul %15, %4, %cst {dimension_numbers = #tpu.dot_dimension_numbers<[1], [0], [0], [1], [0, 0, 1, 1], [], []>} : vector<8x128xbf16>, vector<128x384xbf16>, vector<8x384xf32> -> vector<8x384xf32>
    %17 = vector.broadcast %6 : vector<1x384xf32> to vector<8x384xf32>
    %18 = arith.addf %16, %17 : vector<8x384xf32>
    %19 = vector.extract_strided_slice %14 {offsets = [0, 0], sizes = [8, 128], strides = [1, 1]} : vector<8x384xf32> to vector<8x128xf32>
    %20 = vector.extract_strided_slice %18 {offsets = [0, 0], sizes = [8, 128], strides = [1, 1]} : vector<8x384xf32> to vector<8x128xf32>
    %21 = arith.addf %19, %20 : vector<8x128xf32>
    %22 = arith.negf %21 : vector<8x128xf32>
    %23 = math.exp %22 : vector<8x128xf32>
    %cst_12 = arith.constant 1.000000e+00 : f32
    %24 = vector.broadcast %cst_12 : f32 to vector<8x128xf32>
    %25 = arith.addf %24, %23 : vector<8x128xf32>
    %26 = arith.divf %24, %25 : vector<8x128xf32>
    %27 = vector.extract_strided_slice %14 {offsets = [0, 128], sizes = [8, 128], strides = [1, 1]} : vector<8x384xf32> to vector<8x128xf32>
    %28 = vector.extract_strided_slice %18 {offsets = [0, 128], sizes = [8, 128], strides = [1, 1]} : vector<8x384xf32> to vector<8x128xf32>
    %29 = arith.addf %27, %28 : vector<8x128xf32>
    %30 = arith.negf %29 : vector<8x128xf32>
    %31 = math.exp %30 : vector<8x128xf32>
    %cst_13 = arith.constant 1.000000e+00 : f32
    %32 = vector.broadcast %cst_13 : f32 to vector<8x128xf32>
    %33 = arith.addf %32, %31 : vector<8x128xf32>
    %34 = arith.divf %32, %33 : vector<8x128xf32>
    %35 = vector.extract_strided_slice %14 {offsets = [0, 256], sizes = [8, 128], strides = [1, 1]} : vector<8x384xf32> to vector<8x128xf32>
    %36 = vector.extract_strided_slice %18 {offsets = [0, 256], sizes = [8, 128], strides = [1, 1]} : vector<8x384xf32> to vector<8x128xf32>
    %37 = arith.mulf %26, %36 : vector<8x128xf32>
    %38 = arith.addf %35, %37 : vector<8x128xf32>
    %39 = math.tanh %38 : vector<8x128xf32>
    %40 = arith.subf %7, %39 : vector<8x128xf32>
    %41 = arith.mulf %34, %40 : vector<8x128xf32>
    %42 = arith.addf %39, %41 : vector<8x128xf32>
    %43 = arith.truncf %42 : vector<8x128xf32> to vector<8x128xbf16>
    %c0_14 = arith.constant 0 : index
    %44 = arith.index_cast %11 : i32 to index
    %c0_15 = arith.constant 0 : index
    %c0_16 = arith.constant 0 : index
    %45 = vector.load %arg5[%c0_14, %44, %c0_15, %c0_16] : memref<1x8x8x128xbf16, #tpu.memory_space<vmem>>, vector<1x1x8x128xbf16>
    %46 = vector.shape_cast %45 : vector<1x1x8x128xbf16> to vector<8x128xbf16>
    %47 = vector.shape_cast %43 : vector<8x128xbf16> to vector<1x1x8x128xbf16>
    tpu.vector_store %arg5[%c0_14, %44, %c0_15, %c0_16], %47 {strides = array<i32>} : memref<1x8x8x128xbf16, #tpu.memory_space<vmem>>, vector<1x1x8x128xbf16>,
    %c1_i32 = arith.constant 1 : i32
    %c2_i32_17 = arith.constant 2 : i32
    %48 = arith.muli %c2_i32_17, %c1_i32 : i32
    %c7_i32_18 = arith.constant 7 : i32
    %49 = arith.subi %c7_i32_18, %48 : i32
    %50 = arith.muli %arg0, %49 : i32
    %51 = arith.addi %c1_i32, %50 : i32
    %c0_19 = arith.constant 0 : index
    %52 = arith.index_cast %51 : i32 to index
    %c0_20 = arith.constant 0 : index
    %c0_21 = arith.constant 0 : index
    %53 = vector.load %arg2[%c0_19, %52, %c0_20, %c0_21] : memref<1x8x8x384xf32, #tpu.memory_space<vmem>>, vector<1x1x8x384xf32>
    %54 = vector.shape_cast %53 : vector<1x1x8x384xf32> to vector<8x384xf32>
    %55 = arith.truncf %42 : vector<8x128xf32> to vector<8x128xbf16>
    %cst_22 = arith.constant dense<0.000000e+00> : vector<8x384xf32>
    %56 = tpu.matmul %55, %4, %cst_22 {dimension_numbers = #tpu.dot_dimension_numbers<[1], [0], [0], [1], [0, 0, 1, 1], [], []>} : vector<8x128xbf16>, vector<128x384xbf16>, vector<8x384xf32> -> vector<8x384xf32>
    %57 = vector.broadcast %6 : vector<1x384xf32> to vector<8x384xf32>
    %58 = arith.addf %56, %57 : vector<8x384xf32>
    %59 = vector.extract_strided_slice %54 {offsets = [0, 0], sizes = [8, 128], strides = [1, 1]} : vector<8x384xf32> to vector<8x128xf32>
    %60 = vector.extract_strided_slice %58 {offsets = [0, 0], sizes = [8, 128], strides = [1, 1]} : vector<8x384xf32> to vector<8x128xf32>
    %61 = arith.addf %59, %60 : vector<8x128xf32>
    %62 = arith.negf %61 : vector<8x128xf32>
    %63 = math.exp %62 : vector<8x128xf32>
    %cst_23 = arith.constant 1.000000e+00 : f32
    %64 = vector.broadcast %cst_23 : f32 to vector<8x128xf32>
    %65 = arith.addf %64, %63 : vector<8x128xf32>
    %66 = arith.divf %64, %65 : vector<8x128xf32>
    %67 = vector.extract_strided_slice %54 {offsets = [0, 128], sizes = [8, 128], strides = [1, 1]} : vector<8x384xf32> to vector<8x128xf32>
    %68 = vector.extract_strided_slice %58 {offsets = [0, 128], sizes = [8, 128], strides = [1, 1]} : vector<8x384xf32> to vector<8x128xf32>
    %69 = arith.addf %67, %68 : vector<8x128xf32>
    %70 = arith.negf %69 : vector<8x128xf32>
    %71 = math.exp %70 : vector<8x128xf32>
    %cst_24 = arith.constant 1.000000e+00 : f32
    %72 = vector.broadcast %cst_24 : f32 to vector<8x128xf32>
    %73 = arith.addf %72, %71 : vector<8x128xf32>
    %74 = arith.divf %72, %73 : vector<8x128xf32>
    %75 = vector.extract_strided_slice %54 {offsets = [0, 256], sizes = [8, 128], strides = [1, 1]} : vector<8x384xf32> to vector<8x128xf32>
    %76 = vector.extract_strided_slice %58 {offsets = [0, 256], sizes = [8, 128], strides = [1, 1]} : vector<8x384xf32> to vector<8x128xf32>
    %77 = arith.mulf %66, %76 : vector<8x128xf32>
    %78 = arith.addf %75, %77 : vector<8x128xf32>
    %79 = math.tanh %78 : vector<8x128xf32>
    %80 = arith.subf %42, %79 : vector<8x128xf32>
    %81 = arith.mulf %74, %80 : vector<8x128xf32>
    %82 = arith.addf %79, %81 : vector<8x128xf32>
    %83 = arith.truncf %82 : vector<8x128xf32> to vector<8x128xbf16>
    %c0_25 = arith.constant 0 : index
    %84 = arith.index_cast %51 : i32 to index
    %c0_26 = arith.constant 0 : index
    %c0_27 = arith.constant 0 : index
    %85 = vector.load %arg5[%c0_25, %84, %c0_26, %c0_27] : memref<1x8x8x128xbf16, #tpu.memory_space<vmem>>, vector<1x1x8x128xbf16>
    %86 = vector.shape_cast %85 : vector<1x1x8x128xbf16> to vector<8x128xbf16>
    %87 = vector.shape_cast %83 : vector<8x128xbf16> to vector<1x1x8x128xbf16>
    tpu.vector_store %arg5[%c0_25, %84, %c0_26, %c0_27], %87 {strides = array<i32>} : memref<1x8x8x128xbf16, #tpu.memory_space<vmem>>, vector<1x1x8x128xbf16>,
    %c2_i32_28 = arith.constant 2 : i32
    %c2_i32_29 = arith.constant 2 : i32
    %88 = arith.muli %c2_i32_29, %c2_i32_28 : i32
    %c7_i32_30 = arith.constant 7 : i32
    %89 = arith.subi %c7_i32_30, %88 : i32
    %90 = arith.muli %arg0, %89 : i32
    %91 = arith.addi %c2_i32_28, %90 : i32
    %c0_31 = arith.constant 0 : index
    %92 = arith.index_cast %91 : i32 to index
    %c0_32 = arith.constant 0 : index
    %c0_33 = arith.constant 0 : index
    %93 = vector.load %arg2[%c0_31, %92, %c0_32, %c0_33] : memref<1x8x8x384xf32, #tpu.memory_space<vmem>>, vector<1x1x8x384xf32>
    %94 = vector.shape_cast %93 : vector<1x1x8x384xf32> to vector<8x384xf32>
    %95 = arith.truncf %82 : vector<8x128xf32> to vector<8x128xbf16>
    %cst_34 = arith.constant dense<0.000000e+00> : vector<8x384xf32>
    %96 = tpu.matmul %95, %4, %cst_34 {dimension_numbers = #tpu.dot_dimension_numbers<[1], [0], [0], [1], [0, 0, 1, 1], [], []>} : vector<8x128xbf16>, vector<128x384xbf16>, vector<8x384xf32> -> vector<8x384xf32>
    %97 = vector.broadcast %6 : vector<1x384xf32> to vector<8x384xf32>
    %98 = arith.addf %96, %97 : vector<8x384xf32>
    %99 = vector.extract_strided_slice %94 {offsets = [0, 0], sizes = [8, 128], strides = [1, 1]} : vector<8x384xf32> to vector<8x128xf32>
    %100 = vector.extract_strided_slice %98 {offsets = [0, 0], sizes = [8, 128], strides = [1, 1]} : vector<8x384xf32> to vector<8x128xf32>
    %101 = arith.addf %99, %100 : vector<8x128xf32>
    %102 = arith.negf %101 : vector<8x128xf32>
    %103 = math.exp %102 : vector<8x128xf32>
    %cst_35 = arith.constant 1.000000e+00 : f32
    %104 = vector.broadcast %cst_35 : f32 to vector<8x128xf32>
    %105 = arith.addf %104, %103 : vector<8x128xf32>
    %106 = arith.divf %104, %105 : vector<8x128xf32>
    %107 = vector.extract_strided_slice %94 {offsets = [0, 128], sizes = [8, 128], strides = [1, 1]} : vector<8x384xf32> to vector<8x128xf32>
    %108 = vector.extract_strided_slice %98 {offsets = [0, 128], sizes = [8, 128], strides = [1, 1]} : vector<8x384xf32> to vector<8x128xf32>
    %109 = arith.addf %107, %108 : vector<8x128xf32>
    %110 = arith.negf %109 : vector<8x128xf32>
    %111 = math.exp %110 : vector<8x128xf32>
    %cst_36 = arith.constant 1.000000e+00 : f32
    %112 = vector.broadcast %cst_36 : f32 to vector<8x128xf32>
    %113 = arith.addf %112, %111 : vector<8x128xf32>
    %114 = arith.divf %112, %113 : vector<8x128xf32>
    %115 = vector.extract_strided_slice %94 {offsets = [0, 256], sizes = [8, 128], strides = [1, 1]} : vector<8x384xf32> to vector<8x128xf32>
    %116 = vector.extract_strided_slice %98 {offsets = [0, 256], sizes = [8, 128], strides = [1, 1]} : vector<8x384xf32> to vector<8x128xf32>
    %117 = arith.mulf %106, %116 : vector<8x128xf32>
    %118 = arith.addf %115, %117 : vector<8x128xf32>
    %119 = math.tanh %118 : vector<8x128xf32>
    %120 = arith.subf %82, %119 : vector<8x128xf32>
    %121 = arith.mulf %114, %120 : vector<8x128xf32>
    %122 = arith.addf %119, %121 : vector<8x128xf32>
    %123 = arith.truncf %122 : vector<8x128xf32> to vector<8x128xbf16>
    %c0_37 = arith.constant 0 : index
    %124 = arith.index_cast %91 : i32 to index
    %c0_38 = arith.constant 0 : index
    %c0_39 = arith.constant 0 : index
    %125 = vector.load %arg5[%c0_37, %124, %c0_38, %c0_39] : memref<1x8x8x128xbf16, #tpu.memory_space<vmem>>, vector<1x1x8x128xbf16>
    %126 = vector.shape_cast %125 : vector<1x1x8x128xbf16> to vector<8x128xbf16>
    %127 = vector.shape_cast %123 : vector<8x128xbf16> to vector<1x1x8x128xbf16>
    tpu.vector_store %arg5[%c0_37, %124, %c0_38, %c0_39], %127 {strides = array<i32>} : memref<1x8x8x128xbf16, #tpu.memory_space<vmem>>, vector<1x1x8x128xbf16>,
    %c3_i32 = arith.constant 3 : i32
    %c2_i32_40 = arith.constant 2 : i32
    %128 = arith.muli %c2_i32_40, %c3_i32 : i32
    %c7_i32_41 = arith.constant 7 : i32
    %129 = arith.subi %c7_i32_41, %128 : i32
    %130 = arith.muli %arg0, %129 : i32
    %131 = arith.addi %c3_i32, %130 : i32
    %c0_42 = arith.constant 0 : index
    %132 = arith.index_cast %131 : i32 to index
    %c0_43 = arith.constant 0 : index
    %c0_44 = arith.constant 0 : index
    %133 = vector.load %arg2[%c0_42, %132, %c0_43, %c0_44] : memref<1x8x8x384xf32, #tpu.memory_space<vmem>>, vector<1x1x8x384xf32>
    %134 = vector.shape_cast %133 : vector<1x1x8x384xf32> to vector<8x384xf32>
    %135 = arith.truncf %122 : vector<8x128xf32> to vector<8x128xbf16>
    %cst_45 = arith.constant dense<0.000000e+00> : vector<8x384xf32>
    %136 = tpu.matmul %135, %4, %cst_45 {dimension_numbers = #tpu.dot_dimension_numbers<[1], [0], [0], [1], [0, 0, 1, 1], [], []>} : vector<8x128xbf16>, vector<128x384xbf16>, vector<8x384xf32> -> vector<8x384xf32>
    %137 = vector.broadcast %6 : vector<1x384xf32> to vector<8x384xf32>
    %138 = arith.addf %136, %137 : vector<8x384xf32>
    %139 = vector.extract_strided_slice %134 {offsets = [0, 0], sizes = [8, 128], strides = [1, 1]} : vector<8x384xf32> to vector<8x128xf32>
    %140 = vector.extract_strided_slice %138 {offsets = [0, 0], sizes = [8, 128], strides = [1, 1]} : vector<8x384xf32> to vector<8x128xf32>
    %141 = arith.addf %139, %140 : vector<8x128xf32>
    %142 = arith.negf %141 : vector<8x128xf32>
    %143 = math.exp %142 : vector<8x128xf32>
    %cst_46 = arith.constant 1.000000e+00 : f32
    %144 = vector.broadcast %cst_46 : f32 to vector<8x128xf32>
    %145 = arith.addf %144, %143 : vector<8x128xf32>
    %146 = arith.divf %144, %145 : vector<8x128xf32>
    %147 = vector.extract_strided_slice %134 {offsets = [0, 128], sizes = [8, 128], strides = [1, 1]} : vector<8x384xf32> to vector<8x128xf32>
    %148 = vector.extract_strided_slice %138 {offsets = [0, 128], sizes = [8, 128], strides = [1, 1]} : vector<8x384xf32> to vector<8x128xf32>
    %149 = arith.addf %147, %148 : vector<8x128xf32>
    %150 = arith.negf %149 : vector<8x128xf32>
    %151 = math.exp %150 : vector<8x128xf32>
    %cst_47 = arith.constant 1.000000e+00 : f32
    %152 = vector.broadcast %cst_47 : f32 to vector<8x128xf32>
    %153 = arith.addf %152, %151 : vector<8x128xf32>
    %154 = arith.divf %152, %153 : vector<8x128xf32>
    %155 = vector.extract_strided_slice %134 {offsets = [0, 256], sizes = [8, 128], strides = [1, 1]} : vector<8x384xf32> to vector<8x128xf32>
    %156 = vector.extract_strided_slice %138 {offsets = [0, 256], sizes = [8, 128], strides = [1, 1]} : vector<8x384xf32> to vector<8x128xf32>
    %157 = arith.mulf %146, %156 : vector<8x128xf32>
    %158 = arith.addf %155, %157 : vector<8x128xf32>
    %159 = math.tanh %158 : vector<8x128xf32>
    %160 = arith.subf %122, %159 : vector<8x128xf32>
    %161 = arith.mulf %154, %160 : vector<8x128xf32>
    %162 = arith.addf %159, %161 : vector<8x128xf32>
    %163 = arith.truncf %162 : vector<8x128xf32> to vector<8x128xbf16>
    %c0_48 = arith.constant 0 : index
    %164 = arith.index_cast %131 : i32 to index
    %c0_49 = arith.constant 0 : index
    %c0_50 = arith.constant 0 : index
    %165 = vector.load %arg5[%c0_48, %164, %c0_49, %c0_50] : memref<1x8x8x128xbf16, #tpu.memory_space<vmem>>, vector<1x1x8x128xbf16>
    %166 = vector.shape_cast %165 : vector<1x1x8x128xbf16> to vector<8x128xbf16>
    %167 = vector.shape_cast %163 : vector<8x128xbf16> to vector<1x1x8x128xbf16>
    tpu.vector_store %arg5[%c0_48, %164, %c0_49, %c0_50], %167 {strides = array<i32>} : memref<1x8x8x128xbf16, #tpu.memory_space<vmem>>, vector<1x1x8x128xbf16>,
    %c4_i32 = arith.constant 4 : i32
    %c2_i32_51 = arith.constant 2 : i32
    %168 = arith.muli %c2_i32_51, %c4_i32 : i32
    %c7_i32_52 = arith.constant 7 : i32
    %169 = arith.subi %c7_i32_52, %168 : i32
    %170 = arith.muli %arg0, %169 : i32
    %171 = arith.addi %c4_i32, %170 : i32
    %c0_53 = arith.constant 0 : index
    %172 = arith.index_cast %171 : i32 to index
    %c0_54 = arith.constant 0 : index
    %c0_55 = arith.constant 0 : index
    %173 = vector.load %arg2[%c0_53, %172, %c0_54, %c0_55] : memref<1x8x8x384xf32, #tpu.memory_space<vmem>>, vector<1x1x8x384xf32>
    %174 = vector.shape_cast %173 : vector<1x1x8x384xf32> to vector<8x384xf32>
    %175 = arith.truncf %162 : vector<8x128xf32> to vector<8x128xbf16>
    %cst_56 = arith.constant dense<0.000000e+00> : vector<8x384xf32>
    %176 = tpu.matmul %175, %4, %cst_56 {dimension_numbers = #tpu.dot_dimension_numbers<[1], [0], [0], [1], [0, 0, 1, 1], [], []>} : vector<8x128xbf16>, vector<128x384xbf16>, vector<8x384xf32> -> vector<8x384xf32>
    %177 = vector.broadcast %6 : vector<1x384xf32> to vector<8x384xf32>
    %178 = arith.addf %176, %177 : vector<8x384xf32>
    %179 = vector.extract_strided_slice %174 {offsets = [0, 0], sizes = [8, 128], strides = [1, 1]} : vector<8x384xf32> to vector<8x128xf32>
    %180 = vector.extract_strided_slice %178 {offsets = [0, 0], sizes = [8, 128], strides = [1, 1]} : vector<8x384xf32> to vector<8x128xf32>
    %181 = arith.addf %179, %180 : vector<8x128xf32>
    %182 = arith.negf %181 : vector<8x128xf32>
    %183 = math.exp %182 : vector<8x128xf32>
    %cst_57 = arith.constant 1.000000e+00 : f32
    %184 = vector.broadcast %cst_57 : f32 to vector<8x128xf32>
    %185 = arith.addf %184, %183 : vector<8x128xf32>
    %186 = arith.divf %184, %185 : vector<8x128xf32>
    %187 = vector.extract_strided_slice %174 {offsets = [0, 128], sizes = [8, 128], strides = [1, 1]} : vector<8x384xf32> to vector<8x128xf32>
    %188 = vector.extract_strided_slice %178 {offsets = [0, 128], sizes = [8, 128], strides = [1, 1]} : vector<8x384xf32> to vector<8x128xf32>
    %189 = arith.addf %187, %188 : vector<8x128xf32>
    %190 = arith.negf %189 : vector<8x128xf32>
    %191 = math.exp %190 : vector<8x128xf32>
    %cst_58 = arith.constant 1.000000e+00 : f32
    %192 = vector.broadcast %cst_58 : f32 to vector<8x128xf32>
    %193 = arith.addf %192, %191 : vector<8x128xf32>
    %194 = arith.divf %192, %193 : vector<8x128xf32>
    %195 = vector.extract_strided_slice %174 {offsets = [0, 256], sizes = [8, 128], strides = [1, 1]} : vector<8x384xf32> to vector<8x128xf32>
    %196 = vector.extract_strided_slice %178 {offsets = [0, 256], sizes = [8, 128], strides = [1, 1]} : vector<8x384xf32> to vector<8x128xf32>
    %197 = arith.mulf %186, %196 : vector<8x128xf32>
    %198 = arith.addf %195, %197 : vector<8x128xf32>
    %199 = math.tanh %198 : vector<8x128xf32>
    %200 = arith.subf %162, %199 : vector<8x128xf32>
    %201 = arith.mulf %194, %200 : vector<8x128xf32>
    %202 = arith.addf %199, %201 : vector<8x128xf32>
    %203 = arith.truncf %202 : vector<8x128xf32> to vector<8x128xbf16>
    %c0_59 = arith.constant 0 : index
    %204 = arith.index_cast %171 : i32 to index
    %c0_60 = arith.constant 0 : index
    %c0_61 = arith.constant 0 : index
    %205 = vector.load %arg5[%c0_59, %204, %c0_60, %c0_61] : memref<1x8x8x128xbf16, #tpu.memory_space<vmem>>, vector<1x1x8x128xbf16>
    %206 = vector.shape_cast %205 : vector<1x1x8x128xbf16> to vector<8x128xbf16>
    %207 = vector.shape_cast %203 : vector<8x128xbf16> to vector<1x1x8x128xbf16>
    tpu.vector_store %arg5[%c0_59, %204, %c0_60, %c0_61], %207 {strides = array<i32>} : memref<1x8x8x128xbf16, #tpu.memory_space<vmem>>, vector<1x1x8x128xbf16>,
    %c5_i32 = arith.constant 5 : i32
    %c2_i32_62 = arith.constant 2 : i32
    %208 = arith.muli %c2_i32_62, %c5_i32 : i32
    %c7_i32_63 = arith.constant 7 : i32
    %209 = arith.subi %c7_i32_63, %208 : i32
    %210 = arith.muli %arg0, %209 : i32
    %211 = arith.addi %c5_i32, %210 : i32
    %c0_64 = arith.constant 0 : index
    %212 = arith.index_cast %211 : i32 to index
    %c0_65 = arith.constant 0 : index
    %c0_66 = arith.constant 0 : index
    %213 = vector.load %arg2[%c0_64, %212, %c0_65, %c0_66] : memref<1x8x8x384xf32, #tpu.memory_space<vmem>>, vector<1x1x8x384xf32>
    %214 = vector.shape_cast %213 : vector<1x1x8x384xf32> to vector<8x384xf32>
    %215 = arith.truncf %202 : vector<8x128xf32> to vector<8x128xbf16>
    %cst_67 = arith.constant dense<0.000000e+00> : vector<8x384xf32>
    %216 = tpu.matmul %215, %4, %cst_67 {dimension_numbers = #tpu.dot_dimension_numbers<[1], [0], [0], [1], [0, 0, 1, 1], [], []>} : vector<8x128xbf16>, vector<128x384xbf16>, vector<8x384xf32> -> vector<8x384xf32>
    %217 = vector.broadcast %6 : vector<1x384xf32> to vector<8x384xf32>
    %218 = arith.addf %216, %217 : vector<8x384xf32>
    %219 = vector.extract_strided_slice %214 {offsets = [0, 0], sizes = [8, 128], strides = [1, 1]} : vector<8x384xf32> to vector<8x128xf32>
    %220 = vector.extract_strided_slice %218 {offsets = [0, 0], sizes = [8, 128], strides = [1, 1]} : vector<8x384xf32> to vector<8x128xf32>
    %221 = arith.addf %219, %220 : vector<8x128xf32>
    %222 = arith.negf %221 : vector<8x128xf32>
    %223 = math.exp %222 : vector<8x128xf32>
    %cst_68 = arith.constant 1.000000e+00 : f32
    %224 = vector.broadcast %cst_68 : f32 to vector<8x128xf32>
    %225 = arith.addf %224, %223 : vector<8x128xf32>
    %226 = arith.divf %224, %225 : vector<8x128xf32>
    %227 = vector.extract_strided_slice %214 {offsets = [0, 128], sizes = [8, 128], strides = [1, 1]} : vector<8x384xf32> to vector<8x128xf32>
    %228 = vector.extract_strided_slice %218 {offsets = [0, 128], sizes = [8, 128], strides = [1, 1]} : vector<8x384xf32> to vector<8x128xf32>
    %229 = arith.addf %227, %228 : vector<8x128xf32>
    %230 = arith.negf %229 : vector<8x128xf32>
    %231 = math.exp %230 : vector<8x128xf32>
    %cst_69 = arith.constant 1.000000e+00 : f32
    %232 = vector.broadcast %cst_69 : f32 to vector<8x128xf32>
    %233 = arith.addf %232, %231 : vector<8x128xf32>
    %234 = arith.divf %232, %233 : vector<8x128xf32>
    %235 = vector.extract_strided_slice %214 {offsets = [0, 256], sizes = [8, 128], strides = [1, 1]} : vector<8x384xf32> to vector<8x128xf32>
    %236 = vector.extract_strided_slice %218 {offsets = [0, 256], sizes = [8, 128], strides = [1, 1]} : vector<8x384xf32> to vector<8x128xf32>
    %237 = arith.mulf %226, %236 : vector<8x128xf32>
    %238 = arith.addf %235, %237 : vector<8x128xf32>
    %239 = math.tanh %238 : vector<8x128xf32>
    %240 = arith.subf %202, %239 : vector<8x128xf32>
    %241 = arith.mulf %234, %240 : vector<8x128xf32>
    %242 = arith.addf %239, %241 : vector<8x128xf32>
    %243 = arith.truncf %242 : vector<8x128xf32> to vector<8x128xbf16>
    %c0_70 = arith.constant 0 : index
    %244 = arith.index_cast %211 : i32 to index
    %c0_71 = arith.constant 0 : index
    %c0_72 = arith.constant 0 : index
    %245 = vector.load %arg5[%c0_70, %244, %c0_71, %c0_72] : memref<1x8x8x128xbf16, #tpu.memory_space<vmem>>, vector<1x1x8x128xbf16>
    %246 = vector.shape_cast %245 : vector<1x1x8x128xbf16> to vector<8x128xbf16>
    %247 = vector.shape_cast %243 : vector<8x128xbf16> to vector<1x1x8x128xbf16>
    tpu.vector_store %arg5[%c0_70, %244, %c0_71, %c0_72], %247 {strides = array<i32>} : memref<1x8x8x128xbf16, #tpu.memory_space<vmem>>, vector<1x1x8x128xbf16>,
    %c6_i32 = arith.constant 6 : i32
    %c2_i32_73 = arith.constant 2 : i32
    %248 = arith.muli %c2_i32_73, %c6_i32 : i32
    %c7_i32_74 = arith.constant 7 : i32
    %249 = arith.subi %c7_i32_74, %248 : i32
    %250 = arith.muli %arg0, %249 : i32
    %251 = arith.addi %c6_i32, %250 : i32
    %c0_75 = arith.constant 0 : index
    %252 = arith.index_cast %251 : i32 to index
    %c0_76 = arith.constant 0 : index
    %c0_77 = arith.constant 0 : index
    %253 = vector.load %arg2[%c0_75, %252, %c0_76, %c0_77] : memref<1x8x8x384xf32, #tpu.memory_space<vmem>>, vector<1x1x8x384xf32>
    %254 = vector.shape_cast %253 : vector<1x1x8x384xf32> to vector<8x384xf32>
    %255 = arith.truncf %242 : vector<8x128xf32> to vector<8x128xbf16>
    %cst_78 = arith.constant dense<0.000000e+00> : vector<8x384xf32>
    %256 = tpu.matmul %255, %4, %cst_78 {dimension_numbers = #tpu.dot_dimension_numbers<[1], [0], [0], [1], [0, 0, 1, 1], [], []>} : vector<8x128xbf16>, vector<128x384xbf16>, vector<8x384xf32> -> vector<8x384xf32>
    %257 = vector.broadcast %6 : vector<1x384xf32> to vector<8x384xf32>
    %258 = arith.addf %256, %257 : vector<8x384xf32>
    %259 = vector.extract_strided_slice %254 {offsets = [0, 0], sizes = [8, 128], strides = [1, 1]} : vector<8x384xf32> to vector<8x128xf32>
    %260 = vector.extract_strided_slice %258 {offsets = [0, 0], sizes = [8, 128], strides = [1, 1]} : vector<8x384xf32> to vector<8x128xf32>
    %261 = arith.addf %259, %260 : vector<8x128xf32>
    %262 = arith.negf %261 : vector<8x128xf32>
    %263 = math.exp %262 : vector<8x128xf32>
    %cst_79 = arith.constant 1.000000e+00 : f32
    %264 = vector.broadcast %cst_79 : f32 to vector<8x128xf32>
    %265 = arith.addf %264, %263 : vector<8x128xf32>
    %266 = arith.divf %264, %265 : vector<8x128xf32>
    %267 = vector.extract_strided_slice %254 {offsets = [0, 128], sizes = [8, 128], strides = [1, 1]} : vector<8x384xf32> to vector<8x128xf32>
    %268 = vector.extract_strided_slice %258 {offsets = [0, 128], sizes = [8, 128], strides = [1, 1]} : vector<8x384xf32> to vector<8x128xf32>
    %269 = arith.addf %267, %268 : vector<8x128xf32>
    %270 = arith.negf %269 : vector<8x128xf32>
    %271 = math.exp %270 : vector<8x128xf32>
    %cst_80 = arith.constant 1.000000e+00 : f32
    %272 = vector.broadcast %cst_80 : f32 to vector<8x128xf32>
    %273 = arith.addf %272, %271 : vector<8x128xf32>
    %274 = arith.divf %272, %273 : vector<8x128xf32>
    %275 = vector.extract_strided_slice %254 {offsets = [0, 256], sizes = [8, 128], strides = [1, 1]} : vector<8x384xf32> to vector<8x128xf32>
    %276 = vector.extract_strided_slice %258 {offsets = [0, 256], sizes = [8, 128], strides = [1, 1]} : vector<8x384xf32> to vector<8x128xf32>
    %277 = arith.mulf %266, %276 : vector<8x128xf32>
    %278 = arith.addf %275, %277 : vector<8x128xf32>
    %279 = math.tanh %278 : vector<8x128xf32>
    %280 = arith.subf %242, %279 : vector<8x128xf32>
    %281 = arith.mulf %274, %280 : vector<8x128xf32>
    %282 = arith.addf %279, %281 : vector<8x128xf32>
    %283 = arith.truncf %282 : vector<8x128xf32> to vector<8x128xbf16>
    %c0_81 = arith.constant 0 : index
    %284 = arith.index_cast %251 : i32 to index
    %c0_82 = arith.constant 0 : index
    %c0_83 = arith.constant 0 : index
    %285 = vector.load %arg5[%c0_81, %284, %c0_82, %c0_83] : memref<1x8x8x128xbf16, #tpu.memory_space<vmem>>, vector<1x1x8x128xbf16>
    %286 = vector.shape_cast %285 : vector<1x1x8x128xbf16> to vector<8x128xbf16>
    %287 = vector.shape_cast %283 : vector<8x128xbf16> to vector<1x1x8x128xbf16>
    tpu.vector_store %arg5[%c0_81, %284, %c0_82, %c0_83], %287 {strides = array<i32>} : memref<1x8x8x128xbf16, #tpu.memory_space<vmem>>, vector<1x1x8x128xbf16>,
    %c7_i32_84 = arith.constant 7 : i32
    %c2_i32_85 = arith.constant 2 : i32
    %288 = arith.muli %c2_i32_85, %c7_i32_84 : i32
    %c7_i32_86 = arith.constant 7 : i32
    %289 = arith.subi %c7_i32_86, %288 : i32
    %290 = arith.muli %arg0, %289 : i32
    %291 = arith.addi %c7_i32_84, %290 : i32
    %c0_87 = arith.constant 0 : index
    %292 = arith.index_cast %291 : i32 to index
    %c0_88 = arith.constant 0 : index
    %c0_89 = arith.constant 0 : index
    %293 = vector.load %arg2[%c0_87, %292, %c0_88, %c0_89] : memref<1x8x8x384xf32, #tpu.memory_space<vmem>>, vector<1x1x8x384xf32>
    %294 = vector.shape_cast %293 : vector<1x1x8x384xf32> to vector<8x384xf32>
    %295 = arith.truncf %282 : vector<8x128xf32> to vector<8x128xbf16>
    %cst_90 = arith.constant dense<0.000000e+00> : vector<8x384xf32>
    %296 = tpu.matmul %295, %4, %cst_90 {dimension_numbers = #tpu.dot_dimension_numbers<[1], [0], [0], [1], [0, 0, 1, 1], [], []>} : vector<8x128xbf16>, vector<128x384xbf16>, vector<8x384xf32> -> vector<8x384xf32>
    %297 = vector.broadcast %6 : vector<1x384xf32> to vector<8x384xf32>
    %298 = arith.addf %296, %297 : vector<8x384xf32>
    %299 = vector.extract_strided_slice %294 {offsets = [0, 0], sizes = [8, 128], strides = [1, 1]} : vector<8x384xf32> to vector<8x128xf32>
    %300 = vector.extract_strided_slice %298 {offsets = [0, 0], sizes = [8, 128], strides = [1, 1]} : vector<8x384xf32> to vector<8x128xf32>
    %301 = arith.addf %299, %300 : vector<8x128xf32>
    %302 = arith.negf %301 : vector<8x128xf32>
    %303 = math.exp %302 : vector<8x128xf32>
    %cst_91 = arith.constant 1.000000e+00 : f32
    %304 = vector.broadcast %cst_91 : f32 to vector<8x128xf32>
    %305 = arith.addf %304, %303 : vector<8x128xf32>
    %306 = arith.divf %304, %305 : vector<8x128xf32>
    %307 = vector.extract_strided_slice %294 {offsets = [0, 128], sizes = [8, 128], strides = [1, 1]} : vector<8x384xf32> to vector<8x128xf32>
    %308 = vector.extract_strided_slice %298 {offsets = [0, 128], sizes = [8, 128], strides = [1, 1]} : vector<8x384xf32> to vector<8x128xf32>
    %309 = arith.addf %307, %308 : vector<8x128xf32>
    %310 = arith.negf %309 : vector<8x128xf32>
    %311 = math.exp %310 : vector<8x128xf32>
    %cst_92 = arith.constant 1.000000e+00 : f32
    %312 = vector.broadcast %cst_92 : f32 to vector<8x128xf32>
    %313 = arith.addf %312, %311 : vector<8x128xf32>
    %314 = arith.divf %312, %313 : vector<8x128xf32>
    %315 = vector.extract_strided_slice %294 {offsets = [0, 256], sizes = [8, 128], strides = [1, 1]} : vector<8x384xf32> to vector<8x128xf32>
    %316 = vector.extract_strided_slice %298 {offsets = [0, 256], sizes = [8, 128], strides = [1, 1]} : vector<8x384xf32> to vector<8x128xf32>
    %317 = arith.mulf %306, %316 : vector<8x128xf32>
    %318 = arith.addf %315, %317 : vector<8x128xf32>
    %319 = math.tanh %318 : vector<8x128xf32>
    %320 = arith.subf %282, %319 : vector<8x128xf32>
    %321 = arith.mulf %314, %320 : vector<8x128xf32>
    %322 = arith.addf %319, %321 : vector<8x128xf32>
    %323 = arith.truncf %322 : vector<8x128xf32> to vector<8x128xbf16>
    %c0_93 = arith.constant 0 : index
    %324 = arith.index_cast %291 : i32 to index
    %c0_94 = arith.constant 0 : index
    %c0_95 = arith.constant 0 : index
    %325 = vector.load %arg5[%c0_93, %324, %c0_94, %c0_95] : memref<1x8x8x128xbf16, #tpu.memory_space<vmem>>, vector<1x1x8x128xbf16>
    %326 = vector.shape_cast %325 : vector<1x1x8x128xbf16> to vector<8x128xbf16>
    %327 = vector.shape_cast %323 : vector<8x128xbf16> to vector<1x1x8x128xbf16>
    tpu.vector_store %arg5[%c0_93, %324, %c0_94, %c0_95], %327 {strides = array<i32>} : memref<1x8x8x128xbf16, #tpu.memory_space<vmem>>, vector<1x1x8x128xbf16>,
    %c8_i32 = arith.constant 8 : i32
    %c0_96 = arith.constant 0 : index
    %c0_97 = arith.constant 0 : index
    %328 = vector.load %arg6[%c0_96, %c0_97] : memref<8x128xf32, #tpu.memory_space<vmem>>, vector<8x128xf32>
    tpu.vector_store %arg6[%c0_96, %c0_97], %322 {strides = array<i32>} : memref<8x128xf32, #tpu.memory_space<vmem>>, vector<8x128xf32>,
    return
  }
  func.func @transform_0(%arg0: i32, %arg1: i32) -> (i32, i32, i32, i32) {
    %c2_i32 = arith.constant 2 : i32
    %0 = arith.muli %c2_i32, %arg1 : i32
    %c0_i32 = arith.constant 0 : i32
    %1 = arith.subi %c0_i32, %0 : i32
    %2 = arith.muli %arg0, %1 : i32
    %3 = arith.addi %arg1, %2 : i32
    %c0_i32_0 = arith.constant 0 : i32
    %c0_i32_1 = arith.constant 0 : i32
    %c0_i32_2 = arith.constant 0 : i32
    return %arg0, %3, %c0_i32_0, %c0_i32_1 : i32, i32, i32, i32
  }
  func.func @transform_1(%arg0: i32, %arg1: i32) -> (i32, i32, i32) {
    %c0_i32 = arith.constant 0 : i32
    %c0_i32_0 = arith.constant 0 : i32
    %c0_i32_1 = arith.constant 0 : i32
    return %arg0, %c0_i32, %c0_i32_0 : i32, i32, i32
  }
  func.func @transform_2(%arg0: i32, %arg1: i32) -> (i32, i32, i32) {
    %c0_i32 = arith.constant 0 : i32
    %c0_i32_0 = arith.constant 0 : i32
    %c0_i32_1 = arith.constant 0 : i32
    return %arg0, %c0_i32, %c0_i32_0 : i32, i32, i32
  }
  func.func @transform_3(%arg0: i32, %arg1: i32) -> (i32, i32, i32, i32) {
    %c2_i32 = arith.constant 2 : i32
    %0 = arith.muli %c2_i32, %arg1 : i32
    %c0_i32 = arith.constant 0 : i32
    %1 = arith.subi %c0_i32, %0 : i32
    %2 = arith.muli %arg0, %1 : i32
    %3 = arith.addi %arg1, %2 : i32
    %c0_i32_0 = arith.constant 0 : i32
    %c0_i32_1 = arith.constant 0 : i32
    %c0_i32_2 = arith.constant 0 : i32
    return %arg0, %3, %c0_i32_0, %c0_i32_1 : i32, i32, i32, i32
  }
}

module attributes {stable_mosaic.version = 11 : i64} {
  func.func @input_proj_kernel(%arg0: i32, %arg1: i32, %arg2: memref<64x128xbf16, #tpu.memory_space<vmem>>, %arg3: memref<1x128x384xbf16, #tpu.memory_space<vmem>>, %arg4: memref<1x1x384xf32, #tpu.memory_space<vmem>>, %arg5: memref<1x64x384xf32, #tpu.memory_space<vmem>>) attributes {dimension_semantics = [#tpu.dimension_semantics<parallel>, #tpu.dimension_semantics<parallel>], iteration_bounds = array<i64: 2, 1>, scalar_prefetch = 0 : i64, scratch_operands = 0 : i64, tpu.core_type = #tpu.core_type<tc>, window_params = [{transform_indices = @transform_0, window_bounds = array<i64: 64, 128>}, {transform_indices = @transform_1, window_bounds = array<i64: 1, 128, 384>}, {transform_indices = @transform_2, window_bounds = array<i64: 1, 1, 384>}, {transform_indices = @transform_3, window_bounds = array<i64: 1, 64, 384>}]} {
    %c0 = arith.constant 0 : index
    %c0_0 = arith.constant 0 : index
    %0 = vector.load %arg2[%c0, %c0_0] : memref<64x128xbf16, #tpu.memory_space<vmem>>, vector<64x128xbf16>
    %c0_1 = arith.constant 0 : index
    %c0_2 = arith.constant 0 : index
    %c0_3 = arith.constant 0 : index
    %1 = vector.load %arg3[%c0_1, %c0_2, %c0_3] : memref<1x128x384xbf16, #tpu.memory_space<vmem>>, vector<1x128x384xbf16>
    %2 = vector.shape_cast %1 : vector<1x128x384xbf16> to vector<128x384xbf16>
    %cst = arith.constant dense<0.000000e+00> : vector<64x384xf32>
    %3 = tpu.matmul %0, %2, %cst {dimension_numbers = #tpu.dot_dimension_numbers<[1], [0], [0], [1], [0, 0, 1, 1], [], []>} : vector<64x128xbf16>, vector<128x384xbf16>, vector<64x384xf32> -> vector<64x384xf32>
    %c0_4 = arith.constant 0 : index
    %c0_5 = arith.constant 0 : index
    %c0_6 = arith.constant 0 : index
    %4 = vector.load %arg4[%c0_4, %c0_5, %c0_6] : memref<1x1x384xf32, #tpu.memory_space<vmem>>, vector<1x1x384xf32>
    %5 = vector.shape_cast %4 : vector<1x1x384xf32> to vector<1x384xf32>
    %6 = vector.broadcast %5 : vector<1x384xf32> to vector<64x384xf32>
    %7 = arith.addf %3, %6 : vector<64x384xf32>
    %c0_7 = arith.constant 0 : index
    %c0_8 = arith.constant 0 : index
    %c0_9 = arith.constant 0 : index
    %8 = vector.load %arg5[%c0_7, %c0_8, %c0_9] : memref<1x64x384xf32, #tpu.memory_space<vmem>>, vector<1x64x384xf32>
    %9 = vector.shape_cast %8 : vector<1x64x384xf32> to vector<64x384xf32>
    %10 = vector.shape_cast %7 : vector<64x384xf32> to vector<1x64x384xf32>
    tpu.vector_store %arg5[%c0_7, %c0_8, %c0_9], %10 {strides = array<i32>} : memref<1x64x384xf32, #tpu.memory_space<vmem>>, vector<1x64x384xf32>,
    return
  }
  func.func @transform_0(%arg0: i32, %arg1: i32) -> (i32, i32) {
    %c0_i32 = arith.constant 0 : i32
    %c0_i32_0 = arith.constant 0 : i32
    return %arg1, %c0_i32 : i32, i32
  }
  func.func @transform_1(%arg0: i32, %arg1: i32) -> (i32, i32, i32) {
    %c0_i32 = arith.constant 0 : i32
    %c0_i32_0 = arith.constant 0 : i32
    %c0_i32_1 = arith.constant 0 : i32
    return %arg0, %c0_i32, %c0_i32_0 : i32, i32, i32
  }
  func.func @transform_2(%arg0: i32, %arg1: i32) -> (i32, i32, i32) {
    %c0_i32 = arith.constant 0 : i32
    %c0_i32_0 = arith.constant 0 : i32
    %c0_i32_1 = arith.constant 0 : i32
    return %arg0, %c0_i32, %c0_i32_0 : i32, i32, i32
  }
  func.func @transform_3(%arg0: i32, %arg1: i32) -> (i32, i32, i32) {
    %c0_i32 = arith.constant 0 : i32
    %c0_i32_0 = arith.constant 0 : i32
    return %arg0, %arg1, %c0_i32 : i32, i32, i32
  }
}

module attributes {stable_mosaic.version = 11 : i64} {
  func.func @fc_kernel(%arg0: i32, %arg1: memref<1x64x128xbf16, #tpu.memory_space<vmem>>, %arg2: memref<1x64x128xbf16, #tpu.memory_space<vmem>>, %arg3: memref<128x128xbf16, #tpu.memory_space<vmem>>, %arg4: memref<128x128xbf16, #tpu.memory_space<vmem>>, %arg5: memref<1x128xf32, #tpu.memory_space<vmem>>, %arg6: memref<64x128xf32, #tpu.memory_space<vmem>>) attributes {dimension_semantics = [#tpu.dimension_semantics<parallel>], iteration_bounds = array<i64: 1>, scalar_prefetch = 0 : i64, scratch_operands = 0 : i64, tpu.core_type = #tpu.core_type<tc>, window_params = [{transform_indices = @transform_0, window_bounds = array<i64: 1, 64, 128>}, {transform_indices = @transform_1, window_bounds = array<i64: 1, 64, 128>}, {pipeline_mode = #tpu.pipeline_mode<synchronous>, transform_indices = @transform_2, window_bounds = array<i64: 128, 128>}, {pipeline_mode = #tpu.pipeline_mode<synchronous>, transform_indices = @transform_3, window_bounds = array<i64: 128, 128>}, {pipeline_mode = #tpu.pipeline_mode<synchronous>, transform_indices = @transform_4, window_bounds = array<i64: 1, 128>}, {transform_indices = @transform_5, window_bounds = array<i64: 64, 128>}]} {
    %c0 = arith.constant 0 : index
    %c0_0 = arith.constant 0 : index
    %c0_1 = arith.constant 0 : index
    %0 = vector.load %arg1[%c0, %c0_0, %c0_1] : memref<1x64x128xbf16, #tpu.memory_space<vmem>>, vector<1x64x128xbf16>
    %1 = vector.shape_cast %0 : vector<1x64x128xbf16> to vector<64x128xbf16>
    %c0_2 = arith.constant 0 : index
    %c0_3 = arith.constant 0 : index
    %2 = vector.load %arg3[%c0_2, %c0_3] : memref<128x128xbf16, #tpu.memory_space<vmem>>, vector<128x128xbf16>
    %cst = arith.constant dense<0.000000e+00> : vector<64x128xf32>
    %3 = tpu.matmul %1, %2, %cst {dimension_numbers = #tpu.dot_dimension_numbers<[1], [0], [0], [1], [0, 0, 1, 1], [], []>} : vector<64x128xbf16>, vector<128x128xbf16>, vector<64x128xf32> -> vector<64x128xf32>
    %c0_4 = arith.constant 0 : index
    %c0_5 = arith.constant 0 : index
    %c0_6 = arith.constant 0 : index
    %4 = vector.load %arg2[%c0_4, %c0_5, %c0_6] : memref<1x64x128xbf16, #tpu.memory_space<vmem>>, vector<1x64x128xbf16>
    %5 = vector.shape_cast %4 : vector<1x64x128xbf16> to vector<64x128xbf16>
    %c0_7 = arith.constant 0 : index
    %c0_8 = arith.constant 0 : index
    %6 = vector.load %arg4[%c0_7, %c0_8] : memref<128x128xbf16, #tpu.memory_space<vmem>>, vector<128x128xbf16>
    %cst_9 = arith.constant dense<0.000000e+00> : vector<64x128xf32>
    %7 = tpu.matmul %5, %6, %cst_9 {dimension_numbers = #tpu.dot_dimension_numbers<[1], [0], [0], [1], [0, 0, 1, 1], [], []>} : vector<64x128xbf16>, vector<128x128xbf16>, vector<64x128xf32> -> vector<64x128xf32>
    %8 = arith.addf %3, %7 : vector<64x128xf32>
    %c0_10 = arith.constant 0 : index
    %c0_11 = arith.constant 0 : index
    %9 = vector.load %arg5[%c0_10, %c0_11] : memref<1x128xf32, #tpu.memory_space<vmem>>, vector<1x128xf32>
    %10 = vector.broadcast %9 : vector<1x128xf32> to vector<64x128xf32>
    %11 = arith.addf %8, %10 : vector<64x128xf32>
    %c0_12 = arith.constant 0 : index
    %c0_13 = arith.constant 0 : index
    %12 = vector.load %arg6[%c0_12, %c0_13] : memref<64x128xf32, #tpu.memory_space<vmem>>, vector<64x128xf32>
    tpu.vector_store %arg6[%c0_12, %c0_13], %11 {strides = array<i32>} : memref<64x128xf32, #tpu.memory_space<vmem>>, vector<64x128xf32>,
    return
  }
  func.func @transform_0(%arg0: i32) -> (i32, i32, i32) {
    %c0_i32 = arith.constant 0 : i32
    %c0_i32_0 = arith.constant 0 : i32
    %c0_i32_1 = arith.constant 0 : i32
    return %c0_i32, %arg0, %c0_i32_0 : i32, i32, i32
  }
  func.func @transform_1(%arg0: i32) -> (i32, i32, i32) {
    %c1_i32 = arith.constant 1 : i32
    %c0_i32 = arith.constant 0 : i32
    %c0_i32_0 = arith.constant 0 : i32
    return %c1_i32, %arg0, %c0_i32 : i32, i32, i32
  }
  func.func @transform_2(%arg0: i32) -> (i32, i32) {
    %c0_i32 = arith.constant 0 : i32
    %c0_i32_0 = arith.constant 0 : i32
    %c0_i32_1 = arith.constant 0 : i32
    return %c0_i32, %c0_i32_0 : i32, i32
  }
  func.func @transform_3(%arg0: i32) -> (i32, i32) {
    %c0_i32 = arith.constant 0 : i32
    %c0_i32_0 = arith.constant 0 : i32
    %c0_i32_1 = arith.constant 0 : i32
    return %c0_i32, %c0_i32_0 : i32, i32
  }
  func.func @transform_4(%arg0: i32) -> (i32, i32) {
    %c0_i32 = arith.constant 0 : i32
    %c0_i32_0 = arith.constant 0 : i32
    %c0_i32_1 = arith.constant 0 : i32
    return %c0_i32, %c0_i32_0 : i32, i32
  }
  func.func @transform_5(%arg0: i32) -> (i32, i32) {
    %c0_i32 = arith.constant 0 : i32
    %c0_i32_0 = arith.constant 0 : i32
    return %arg0, %c0_i32 : i32, i32
  }
}

</mosaic_0001>

<bundles_post_ra>
// kernel: gru_encoder_forward.3
= control target key start
LH: loop header
LB: loop body
LE: loop exit
PB: predicated region body
PF: predicated region fallthrough
CT: control target
= control target key end

     0   :  { %8 = vsyncpa [#allocation3], 0  ;;  %s1240_s0 = inlined_call_operand.vmem [shape: bf16[64,128], index: 0, kind: input, shape index: {}]   ;;  %s1241_s1 = inlined_call_operand.hbm [shape: bf16[2,128,384], index: 1, kind: input, shape index: {}]   ;;  %s1242_s2 = inlined_call_operand.vmem [shape: f32[2,1,384], index: 2, kind: input, shape index: {}]   ;;  %s1243_s3 = inlined_call_operand.vmem [shape: f32[2,64,384], index: 3, kind: output, shape index: {}]  }
   0x1   :  { %10 = vsyncpa [#allocation3 + $0x1], 0  ;;  %s1031_s12 = smov 0   ;;  %s1033_s13 = smov 0  }
   0x2   :  { %s1035_s14 = smov 0   ;;  %s1037_s15 = smov 0  }
   0x3   :  { %s1039_s16 = smov 0   ;;  %s1041_s17 = smov 0  }
   0x4 LB: > { %s752_s18 = sadd.s32 4294967295, %s1005_s17   ;;  %s28_s19 = sadd.s32 1, %s1001_s16  ;;  %s1005_s17 = sphi %s1041_s17, %s16_s17   ;;  %s1001_s16 = sphi %s1039_s16, %s1250_s16   ;;  %s997_s15 = sphi %s1037_s15, %s1249_s15   ;;  %s993_s14 = sphi %s1035_s14, %s1248_s14   ;;  %s989_s13 = sphi %s1033_s13, %s1247_s13   ;;  %s985_s12 = sphi %s1031_s12, %s1246_s12  }
   0x5   : > { %p30_p0 = scmp.ge.s32.totalorder %s28_s19, 2  ;;  %s61_s20 = sadd.s32 1, %s993_s14 }
   0x6   : > { %p68_p1 = scmp.ne.s32.totalorder %s993_s14, %s989_s13  ;;  %p69_p2 = scmp.eq.s32.totalorder %s1005_s17, 0 }
   0x7   : > { %s1252_s19 = smov (%p30_p0, %s28_s19), 0  ;;  %p74_p4 = scmp.ne.s32.totalorder %s989_s13, %s985_s12 }
   0x8   : > { %p70_p3 = por %p69_p2, %p68_p1  ;;  %s58_s21 = ssub.s32 %s1001_s16, %s1252_s19 }
   0x9   : > { %p75_p5 = scmp.eq.s32.totalorder %s752_s18, 0  ;;  %p59_p6 = scmp.eq.s32.totalorder %s58_s21, 0 }
   0xa   : > { %p837_p8 = scmp.lt.s32.totalorder %s1005_s17, 2  ;;  %s161_s24 = sand.u32 1, %s993_s14  }
   0xb   : > { %p1070_p7 = por %p75_p5, %p74_p4  ;;  %s827_s25 = smul.u32 3072, %s1001_s16 }
   0xc   : > { %s1076_s23 = scalar_select %p59_p6, %s993_s14, %s61_s20  }
   0xd   : > { %s826_s26 = smul.u32 192, %s161_s24  ;;  %s1083_s29 = scalar_lea.hbm %s1241_s1, %s827_s25 }
   0xe   : > { %p1085_p9 = pnand %p837_p8, %p70_p3  ;;  %s1091_s6 = scalar_lea.sflag [#allocation3], %s161_s24 }
   0xf   : > { %s165_s4 = scalar_lea.vmem [#allocation2], %s826_s26  ;;  %s925_s7 = scalar_lea.hbm %s1083_s29, 3072 }
  0x10   : > { %s172_s5 = sshll.u32 %s165_s4, 4  ;;  %p926_p10 = scmp.ne.s32.totalorder %s1083_s29, %s925_s7  ;;  %s1089_s5 = int_to_ptr.vmem [resolvable:$true] %s172_s5 }
  0x11   : > { %p927_p11 = pneg %p1085_p9  ;;  %s930_s10 = scalar_lea.hbm %s1241_s1, 6144 }
  0x12   : > { %p931_p0 = scmp.lt.u32.totalorder %s1083_s29, %s1241_s1  ;;  %p932_p1 = scmp.lt.u32.totalorder %s930_s10, %s925_s7 }
  0x13   : > { %p928_p12 = pnand %p927_p11, %p926_p10  ;;  %p934_p3 = scmp.lt.u32.totalorder %s925_s7, %s1083_s29 }
  0x14   : > { %p933_p2 = por %p932_p1, %p931_p0 }
  0x15   : > { %p929_p13 = pneg %p928_p12 }
  0x16   : > { %p935_p4 = por %p934_p3, %p933_p2 }
  0x18   : > { %p936_p5 = pnand %p935_p4, %p929_p13 }
  0x1a   : > { %939 = shalt.err (!%p936_p5)
}
  0x1b   : > { %s940_s18 = scalar_lea.vmem %s1089_s5, 3072  ;;  %s1007_s20 = smov [#allocation2]  }
  0x1c   : > { %p941_p6 = scmp.ne.s32.totalorder %s1089_s5, %s940_s18  ;;  %s945_s21 = sshll.u32 %s1007_s20, 4  ;;  %s946_s21 = int_to_ptr.vmem [resolvable:$false] %s945_s21 }
  0x1d   : > { %s947_s24 = scalar_lea.vmem %s946_s21, 6144  ;;  %p948_p12 = scmp.lt.s32.totalorder %s1089_s5, %s946_s21 }
  0x1e   : > { %p943_p8 = pnand %p941_p6, %p927_p11  ;;  %p949_p0 = scmp.lt.s32.totalorder %s947_s24, %s940_s18 }
  0x20   : > { %p944_p10 = pneg %p943_p8  ;;  %p950_p1 = por %p949_p0, %p948_p12 }
  0x22   : > { %p951_p2 = pnand %p950_p1, %p944_p10 }
  0x24   : > { %954 = shalt.err (!%p951_p2)
}
  0x25   : > { %s1008_s25 = smov 192   ;;  %s1009_s26 = smov 12  }
  0x26   : > { %836 = dma.hbm_to_vmem [thread:$0]  (!%p1085_p9), %s1083_s29, 3072, %s1089_s5, %s1091_s6, %s1008_s25, %s1008_s25, %s1009_s26  }
  0x27   : > { %p758_p11 = scmp.ge.s32.totalorder %s1005_s17, 1  ;;  %p187_p13 = scmp.lt.s32.totalorder %s1005_s17, 3 }
  0x29   : > { %p188_p3 = pnand %p758_p11, %p187_p13 }
  0x2a   : > { %s193_s27 = sand.u32 (!%p188_p3), 1, %s989_s13  }
  0x2b   : > { %191 = sbr.rel (%p188_p3) target bundleno = 326 (0x146), region = 32  ;;  %s194_s4 = scalar_lea.sflag (!%p188_p3), [#allocation3], %s193_s27 }
  0x2c   : > { %s828_s28 = smul.u32 (!%p188_p3), 192, %s193_s27 }
  0x2e   : > { %s1122_s7 = scalar_lea.vmem (!%p188_p3), [#allocation2], %s828_s28 }
  0x32   : > { %980 = dma.done.wait (%p1070_p7), %s194_s4, 3072  }
  0x33   : > { %982 = vsyncadd (%p1070_p7), %s194_s4, 4294964224  ;;  %v1010_v0 = vmov 0   ;;  %v889_v1 = vld [vmem:[%s1122_s7 + $0x4] ss:$12 sps:$4 sm:$0xff]   ;;  %v891_v2 = vld [vmem:[%s1122_s7] ss:$12 sps:$4 sm:$0xff]   ;;  %v298_v29 = vlaneseq }
  0x34   : > { %497 = vmatprep.mubr.bf16.mxu0 %v1010_v0  ;;  %465 = vmatprep.subr.bf16.mxu0 %v889_v1  ;;  %v892_v3 = vld [vmem:[%s1122_s7 + $0x1c] ss:$12 sps:$4 sm:$0xff]   ;;  %v894_v4 = vld [vmem:[%s1122_s7 + $0x18] ss:$12 sps:$4 sm:$0xff]   ;;  %v895_v5 = vld [vmem:[%s1122_s7 + $0x34] ss:$12 sps:$4 sm:$0xff]  }
  0x35   : > { %466 = vmatpush1.bf16.msra.mxu0 %v891_v2  ;;  %v901_v6 = vld [vmem:[%s1122_s7 + $0x8] ss:$12 sps:$4 sm:$0xff]   ;;  %v897_v7 = vld [vmem:[%s1122_s7 + $0x30] ss:$12 sps:$4 sm:$0xff]   ;;  %v898_v8 = vld [vmem:[%s1122_s7 + $0x4c] ss:$12 sps:$4 sm:$0xff]  }
  0x36   : > { %467 = vmatprep.subr.bf16.mxu0 %v892_v3  ;;  %802 = vmatprep.subr.bf16.mxu1 %v901_v6  ;;  %v905_v9 = vld [vmem:[%s1122_s7 + $0x20] ss:$12 sps:$4 sm:$0xff]   ;;  %v909_v10 = vld [vmem:[%s1122_s7 + $0x38] ss:$12 sps:$4 sm:$0xff]   ;;  %v900_v11 = vld [vmem:[%s1122_s7 + $0x48] ss:$12 sps:$4 sm:$0xff]  }
  0x37   : > { %803 = vmatpush3.bf16.msra.mxu1 %v901_v6  ;;  %v902_v12 = vld [vmem:[%s1122_s7 + $0x64] ss:$12 sps:$4 sm:$0xff]   ;;  %v904_v13 = vld [vmem:[%s1122_s7 + $0x60] ss:$12 sps:$4 sm:$0xff]   ;;  %v906_v15 = vld [vmem:[%s1122_s7 + $0x7c] ss:$12 sps:$4 sm:$0xff]  }
  0x38   : > { %804 = vmatprep.subr.bf16.mxu1 %v905_v9  ;;  %v913_v14 = vld [vmem:[%s1122_s7 + $0x50] ss:$12 sps:$4 sm:$0xff]   ;;  %v918_v16 = vld [vmem:[%s1240_s0] sm:$0xff]   ;;  %v917_v17 = vld [vmem:[%s1122_s7 + $0x68] ss:$12 sps:$4 sm:$0xff]   ;;  %p240_p7 = scmp.lt.s32.totalorder %s997_s15, 1 }
  0x39   : > { %468 = vmatpush1.bf16.msra.mxu0 %v894_v4  ;;  %818 = vmatprep.mubr.bf16.mxu1 %v918_v16  ;;  %v908_v18 = vld [vmem:[%s1122_s7 + $0x78] ss:$12 sps:$4 sm:$0xff]   ;;  %v910_v19 = vld [vmem:[%s1122_s7 + $0x94] ss:$12 sps:$4 sm:$0xff]   ;;  %v912_v21 = vld [vmem:[%s1122_s7 + $0x90] ss:$12 sps:$4 sm:$0xff]  }
  0x3a   : > { %469 = vmatprep.subr.bf16.mxu0 %v895_v5  ;;  %v919_v20 = vld [vmem:[%s1122_s7 + $0x80] ss:$12 sps:$4 sm:$0xff]   ;;  %v920_v23 = vld [vmem:[%s1122_s7 + $0x98] ss:$12 sps:$4 sm:$0xff]   ;;  %v916_v24 = vld [vmem:[%s1122_s7 + $0xa8] ss:$12 sps:$4 sm:$0xff]  }
  0x3b   : > { %805 = vmatpush3.bf16.msra.mxu1 %v905_v9  ;;  %v914_v22 = vld [vmem:[%s1122_s7 + $0xac] ss:$12 sps:$4 sm:$0xff]   ;;  %v922_v25 = vld [vmem:[%s1122_s7 + $0xb0] ss:$12 sps:$4 sm:$0xff]   ;;  %s1254_s15 = smov (!%p240_p7, %s997_s15), 1  ;;  %v299_v30 = vshrl.u32 %v298_v29, 7 }
  0x3c   : > { %806 = vmatprep.subr.bf16.mxu1 %v909_v10  ;;  %v921_v26 = vld [vmem:[%s1240_s0 + $0x8] sm:$0xff]   ;;  %v923_v27 = vld [vmem:[%s1240_s0 + $0x10] sm:$0xff]   ;;  %v924_v28 = vld [vmem:[%s1240_s0 + $0x18] sm:$0xff]   ;;  %s829_s11 = smul.u32 3, %s1254_s15 }
  0x3d   : > { %470 = vmatpush1.bf16.msra.mxu0 %v897_v7  ;;  %v300_v31 = vsub.s32 0, %v299_v30  ;;  %v304_v33 = vsub.s32 1, %v299_v30  ;;  %s830_s21 = smul.u32 192, %s1254_s15  ;;  %v308_v36 = vsub.s32 2, %v299_v30 }
  0x3e   : > { %471 = vmatprep.subr.bf16.mxu0 %v898_v8  ;;  %s243_s20 = scalar_lea.vmem %s1242_s2, %s829_s11 }
  0x3f   : > { %807 = vmatpush3.bf16.msra.mxu1 %v909_v10  ;;  %v296_v32 = vld [vmem:[%s243_s20] sm:$0x7]  ;;  %s1180_s26 = scalar_lea.vmem %s1243_s3, %s830_s21 }
  0x40   : > { %808 = vmatprep.subr.bf16.mxu1 %v913_v14  ;;  %v1173_v34 = vrot.slane %v296_v32, %v300_v31  ;;  %v1175_v35 = vrot.slane %v296_v32, %v304_v33  ;;  %v309_v44 = vrot.slane %v296_v32, %v308_v36 }
  0x41   : > { %472 = vmatpush1.bf16.msra.mxu0 %v900_v11 }
  0x42   : > { %473 = vmatprep.subr.bf16.mxu0 %v902_v12 }
  0x43   : > { %809 = vmatpush3.bf16.msra.mxu1 %v913_v14 }
  0x44   : > { %810 = vmatprep.subr.bf16.mxu1 %v917_v17 }
  0x45   : > { %474 = vmatpush1.bf16.msra.mxu0 %v904_v13 }
  0x46   : > { %475 = vmatprep.subr.bf16.mxu0 %v906_v15 }
  0x47   : > { %811 = vmatpush3.bf16.msra.mxu1 %v917_v17 }
  0x48   : > { %812 = vmatprep.subr.bf16.mxu1 %v919_v20 }
  0x49   : > { %476 = vmatpush1.bf16.msra.mxu0 %v908_v18 }
  0x4a   : > { %477 = vmatprep.subr.bf16.mxu0 %v910_v19 }
  0x4b   : > { %813 = vmatpush3.bf16.msra.mxu1 %v919_v20 }
  0x4c   : > { %814 = vmatprep.subr.bf16.mxu1 %v920_v23 }
  0x4d   : > { %478 = vmatpush1.bf16.msra.mxu0 %v912_v21 }
  0x4e   : > { %479 = vmatprep.subr.bf16.mxu0 %v914_v22 }
  0x4f   : > { %815 = vmatpush3.bf16.msra.mxu1 %v920_v23 }
  0x50   : > { %816 = vmatprep.subr.bf16.mxu1 %v922_v25 }
  0x51   : > { %480 = vmatpush1.bf16.msra.mxu0 %v916_v24 }
  0x53   : > { %817 = vmatpush3.bf16.msra.mxu1 %v922_v25 }
  0x54   : > { %498 = vmatmul.mubr.bf16.vlgmr.msra.gmra.mrb[0].mxu0 %v918_v16 }
  0x55   : > { %507 = vmatprep.mubr.bf16.mxu0 %v1010_v0 }
  0x56   : > { %819 = vmatmul.mubr.bf16.vlgmr.msra.gmra.mrb[0].mxu1 %v921_v26 }
  0x57   : > { %822 = vmatprep.mubr.bf16.mxu1 %v923_v27 }
  0x5c   : > { %508 = vmatmul.mubr.bf16.gmra.mrb[4].mxu0 %v921_v26 }
  0x5d   : > { %517 = vmatprep.mubr.bf16.mxu0 %v1010_v0 }
  0x5e   : > { %823 = vmatmul.mubr.bf16.gmra.mrb[4].mxu1 %v924_v28 }
  0x64   : > { %518 = vmatmul.mubr.bf16.gmra.mrb[8].mxu0 %v923_v27 }
  0x65   : > { %527 = vmatprep.mubr.bf16.mxu0 %v1010_v0 }
  0x6c   : > { %528 = vmatmul.mubr.bf16.gmra.mrb[12].mxu0 %v924_v28 }
 0x127   : > { %v499_v37 = vpop.f32.mrb[0].mxu0 }
 0x128   : > { %v500_v38 = vadd.f32 %v499_v37, %v1173_v34  ;;  %v501_v39 = vpop.f32.mrb[1].mxu0 }
 0x129   : > { %v502_v40 = vadd.f32 %v501_v39, %v1175_v35  ;;  %v503_v41 = vpop.f32.mrb[2].mxu0  ;;  %v820_v46 = vpop.f32.mrb[0].mxu1 }
 0x12a   : > { %603 = vst [vmem:[%s1180_s26] sm:$0xff] %v500_v38  ;;  %v504_v42 = vadd.f32 %v503_v41, %v1173_v34  ;;  %v505_v43 = vpop.f32.mrb[3].mxu0  ;;  %v581_v47 = vadd.f32 %v820_v46, %v309_v44  ;;  %v572_v48 = vpop.f32.mrb[1].mxu1 }
 0x12b   : > { %604 = vst [vmem:[%s1180_s26 + $0x8] sm:$0xff] %v502_v40  ;;  %v506_v45 = vadd.f32 %v505_v43, %v1175_v35  ;;  %v573_v50 = vadd.f32 %v572_v48, %v309_v44  ;;  %v821_v51 = vpop.f32.mrb[2].mxu1 }
 0x12c   : > { %606 = vst [vmem:[%s1180_s26 + $0x18] sm:$0xff] %v504_v42  ;;  %611 = vst [vmem:[%s1180_s26 + $0x40] sm:$0xff] %v581_v47  ;;  %v584_v54 = vadd.f32 %v821_v51, %v309_v44  ;;  %v575_v55 = vpop.f32.mrb[3].mxu1 }
 0x12d   : > { %607 = vst [vmem:[%s1180_s26 + $0x20] sm:$0xff] %v506_v45  ;;  %605 = vst [vmem:[%s1180_s26 + $0x10] sm:$0xff] %v573_v50  ;;  %v576_v58 = vadd.f32 %v575_v55, %v309_v44 }
 0x12e   : > { %614 = vst [vmem:[%s1180_s26 + $0x58] sm:$0xff] %v584_v54 }
 0x12f   : > { %v509_v49 = vpop.f32.mrb[4].mxu0  ;;  %608 = vst [vmem:[%s1180_s26 + $0x28] sm:$0xff] %v576_v58 }
 0x130   : > { %v510_v52 = vadd.f32 %v509_v49, %v1173_v34  ;;  %v511_v53 = vpop.f32.mrb[5].mxu0 }
 0x131   : > { %v512_v56 = vadd.f32 %v511_v53, %v1175_v35  ;;  %v513_v57 = vpop.f32.mrb[6].mxu0  ;;  %v824_v62 = vpop.f32.mrb[4].mxu1 }
 0x132   : > { %609 = vst [vmem:[%s1180_s26 + $0x30] sm:$0xff] %v510_v52  ;;  %v514_v59 = vadd.f32 %v513_v57, %v1173_v34  ;;  %v515_v60 = vpop.f32.mrb[7].mxu0  ;;  %v597_v63 = vadd.f32 %v824_v62, %v309_v44  ;;  %v588_v0 = vpop.f32.mrb[5].mxu1 }
 0x133   : > { %610 = vst [vmem:[%s1180_s26 + $0x38] sm:$0xff] %v512_v56  ;;  %v516_v61 = vadd.f32 %v515_v60, %v1175_v35  ;;  %v589_v2 = vadd.f32 %v588_v0, %v309_v44  ;;  %v825_v3 = vpop.f32.mrb[6].mxu1 }
 0x134   : > { %612 = vst [vmem:[%s1180_s26 + $0x48] sm:$0xff] %v514_v59  ;;  %623 = vst [vmem:[%s1180_s26 + $0xa0] sm:$0xff] %v597_v63  ;;  %v600_v6 = vadd.f32 %v825_v3, %v309_v44  ;;  %v591_v7 = vpop.f32.mrb[7].mxu1 }
 0x135   : > { %613 = vst [vmem:[%s1180_s26 + $0x50] sm:$0xff] %v516_v61  ;;  %617 = vst [vmem:[%s1180_s26 + $0x70] sm:$0xff] %v589_v2  ;;  %v592_v10 = vadd.f32 %v591_v7, %v309_v44 }
 0x136   : > { %626 = vst [vmem:[%s1180_s26 + $0xb8] sm:$0xff] %v600_v6 }
 0x137   : > { %v519_v1 = vpop.f32.mrb[8].mxu0  ;;  %620 = vst [vmem:[%s1180_s26 + $0x88] sm:$0xff] %v592_v10 }
 0x138   : > { %v520_v4 = vadd.f32 %v519_v1, %v1173_v34  ;;  %v521_v5 = vpop.f32.mrb[9].mxu0 }
 0x139   : > { %v522_v8 = vadd.f32 %v521_v5, %v1175_v35  ;;  %v523_v9 = vpop.f32.mrb[10].mxu0 }
 0x13a   : > { %615 = vst [vmem:[%s1180_s26 + $0x60] sm:$0xff] %v520_v4  ;;  %v524_v11 = vadd.f32 %v523_v9, %v1173_v34  ;;  %v525_v12 = vpop.f32.mrb[11].mxu0 }
 0x13b   : > { %616 = vst [vmem:[%s1180_s26 + $0x68] sm:$0xff] %v522_v8  ;;  %v526_v13 = vadd.f32 %v525_v12, %v1175_v35 }
 0x13c   : > { %618 = vst [vmem:[%s1180_s26 + $0x78] sm:$0xff] %v524_v11 }
 0x13d   : > { %619 = vst [vmem:[%s1180_s26 + $0x80] sm:$0xff] %v526_v13 }
 0x13f   : > { %v529_v14 = vpop.f32.mrb[12].mxu0 }
 0x140   : > { %v530_v15 = vadd.f32 %v529_v14, %v1173_v34  ;;  %v531_v16 = vpop.f32.mrb[13].mxu0 }
 0x141   : > { %v532_v17 = vadd.f32 %v531_v16, %v1175_v35  ;;  %v533_v18 = vpop.f32.mrb[14].mxu0 }
 0x142   : > { %621 = vst [vmem:[%s1180_s26 + $0x90] sm:$0xff] %v530_v15  ;;  %v534_v19 = vadd.f32 %v533_v18, %v1173_v34  ;;  %v535_v20 = vpop.f32.mrb[15].mxu0 }
 0x143   : > { %622 = vst [vmem:[%s1180_s26 + $0x98] sm:$0xff] %v532_v17  ;;  %v536_v21 = vadd.f32 %v535_v20, %v1175_v35 }
 0x144   : > { %624 = vst [vmem:[%s1180_s26 + $0xa8] sm:$0xff] %v534_v19 }
 0x145   : > { %625 = vst [vmem:[%s1180_s26 + $0xb0] sm:$0xff] %v536_v21 }
 0x146 PF: > { %s16_s17 = sadd.s32 1, %s1005_s17   ;;  %s1246_s12 = smov %s989_s13 }
 0x147   : > { %p13_p9 = scmp.ge.s32.totalorder %s16_s17, 4   ;;  %s1247_s13 = smov %s993_s14 }
 0x148   : > { %s1248_s14 = smov %s1076_s23  ;;  %s1249_s15 = smov %s1001_s16 }
 0x149   : > { %s1250_s16 = smov %s1252_s19  ;;  %15 = sbr.rel (!%p13_p9) target bundleno = 4 (0x4), region = 78 }
 0x150   :  { %659 = vsyncpa [#allocation3], 1 }
 0x151   :  { %661 = vsyncpa [#allocation3 + $0x1], 1 }

// kernel: gru_encoder_forward.4
= control target key start
LH: loop header
LB: loop body
LE: loop exit
PB: predicated region body
PF: predicated region fallthrough
CT: control target
= control target key end

     0   :  { %s2105_s12 = smov 0   ;;  %s2107_s13 = smov 0   ;;  %s2610_s0 = inlined_call_operand.vmem [shape: f32[2,8,8,384], index: 0, kind: input, shape index: {}]   ;;  %s2611_s1 = inlined_call_operand.vmem [shape: bf16[2,128,384], index: 1, kind: input, shape index: {}]   ;;  %s2612_s2 = inlined_call_operand.vmem [shape: f32[2,1,384], index: 2, kind: input, shape index: {}]   ;;  %s2613_s3 = inlined_call_operand.vmem [shape: bf16[2,8,8,128], index: 3, kind: output, shape index: {}]  }
   0x1   :  { %s2109_s14 = smov 0  }
   0x2 LB: > { %s25_s15 = sadd.s32 1, %s2075_s13  ;;  %p1569_p0 = scmp.ge.s32.totalorder %s2079_s14, 1  ;;  %s2079_s14 = sphi %s2109_s14, %s13_s14   ;;  %s2075_s13 = sphi %s2107_s13, %s2615_s13   ;;  %s2071_s12 = sphi %s2105_s12, %s2614_s12  }
   0x3   : > { %p27_p1 = scmp.ge.s32.totalorder %s25_s15, 2  ;;  %p202_p2 = scmp.lt.s32.totalorder %s2079_s14, 3 }
   0x5   : > { %s2617_s15 = smov (%p27_p1, %s25_s15), 0  ;;  %p203_p3 = pnand %p1569_p0, %p202_p2 }
   0x6   : > { %p257_p4 = scmp.lt.s32.totalorder (!%p203_p3), %s2071_s12, 1  ;;  %v2081_v0 = vmov (!%p203_p3), 0.0   ;;  %v2082_v1 = vmov (!%p203_p3), 0   ;;  %vm2083_vm0 = vmmov (!%p203_p3), 0   ;;  %v2084_v25 = vmov (!%p203_p3), 0.0|0.0   ;;  %s1657_s25 = smul.u32 (!%p203_p3), 168, %s2071_s12 }
   0x7   : > { %206 = sbr.rel (%p203_p3) target bundleno = 2173 (0x87d), region = 32  ;;  %1732 = vmatprep.subr.bf16.mxu1 (!%p203_p3), %v2081_v0  ;;  %522 = vmatprep.mubr.bf16.mxu0 (!%p203_p3), %v2082_v1  ;;  %v347_v27 = vlaneseq (!%p203_p3)  ;;  %s933_s26 = ssub.s32 (!%p203_p3), 4, %s2071_s12 }
   0x8   : > { %1748 = vmatprep.mubr.msk.bf16.mxu1 (!%p203_p3), %vm2083_vm0, %v2081_v0  ;;  %s1658_s4 = smul.u32 (!%p203_p3), 28, %s2071_s12 }
   0x9   : > { %v348_v28 = vshrl.u32 (!%p203_p3), %v347_v27, 7  ;;  %s1603_s9 = smul.u32 (!%p203_p3), 120, %s2071_s12 }
   0xa   : > { %s1609_s11 = smul.u32 (!%p203_p3), 20, %s2071_s12 }
   0xb   : > { %v349_v29 = vsub.s32 (!%p203_p3), 0, %v348_v28  ;;  %v353_v32 = vsub.s32 (!%p203_p3), 1, %v348_v28  ;;  %v357_v52 = vsub.s32 (!%p203_p3), 2, %v348_v28  ;;  %s1617_s19 = smul.u32 (!%p203_p3), 12, %s2071_s12 }
   0xc   : > { %s1482_s22 = smul.u32 (!%p203_p3), 24, %s2071_s12 }
   0xd   : > { %s1659_s27 = smul.u32 (!%p203_p3), 24, %s933_s26 }
   0xe   : > { %s2129_s16 = scalar_select %p257_p4, %s2071_s12, 1 }
   0xf   : > { %s1630_s5 = smul.u32 4294967224, %s2071_s12 }
  0x10   : > { %s1892_s17 = smul.u32 192, %s2129_s16  ;;  %s1656_s30 = sshll.u32 %s2129_s16, 5 }
  0x11   : > { %s1893_s21 = smul.u32 3, %s2129_s16  ;;  %s2308_s7 = scalar_lea.vmem %s2613_s3, %s1656_s30 }
  0x12   : > { %s2139_s20 = scalar_lea.vmem %s2611_s1, %s1892_s17  ;;  %s2291_s28 = scalar_lea.vmem %s2610_s0, %s1892_s17 }
  0x13   : > { %v2142_v2 = vld [vmem:[%s2139_s20 + $0x4] ss:$12 sps:$4 sm:$0xff]   ;;  %v2145_v3 = vld [vmem:[%s2139_s20] ss:$12 sps:$4 sm:$0xff]   ;;  %v2149_v4 = vld [vmem:[%s2139_s20 + $0x1c] ss:$12 sps:$4 sm:$0xff]   ;;  %s279_s24 = scalar_lea.vmem %s2612_s2, %s1893_s21  ;;  %s341_s29 = scalar_lea.vmem %s2291_s28, %s1657_s25 }
  0x14   : > { %490 = vmatprep.subr.bf16.mxu0 %v2142_v2  ;;  %v2153_v5 = vld [vmem:[%s2139_s20 + $0x18] ss:$12 sps:$4 sm:$0xff]   ;;  %v2157_v6 = vld [vmem:[%s2139_s20 + $0x34] ss:$12 sps:$4 sm:$0xff]   ;;  %v2161_v7 = vld [vmem:[%s2139_s20 + $0x30] ss:$12 sps:$4 sm:$0xff]   ;;  %s593_s8 = scalar_lea.vmem %s2308_s7, %s1658_s4  ;;  %s1468_s10 = scalar_lea.vmem %s2291_s28, %s1603_s9 }
  0x15   : > { %491 = vmatpush1.bf16.msra.mxu0 %v2145_v3  ;;  %v2165_v8 = vld [vmem:[%s2139_s20 + $0x4c] ss:$12 sps:$4 sm:$0xff]   ;;  %v2168_v9 = vld [vmem:[%s2139_s20 + $0x8] ss:$12 sps:$4 sm:$0xff]   ;;  %v2175_v11 = vld [vmem:[%s2139_s20 + $0x64] ss:$12 sps:$4 sm:$0xff]   ;;  %s1472_s16 = scalar_lea.vmem %s2308_s7, %s1609_s11  ;;  %s1480_s21 = scalar_lea.vmem %s2308_s7, %s1617_s19 }
  0x16   : > { %492 = vmatprep.subr.bf16.mxu0 %v2149_v4  ;;  %v2172_v10 = vld [vmem:[%s2139_s20 + $0x48] ss:$12 sps:$4 sm:$0xff]   ;;  %1733 = vmatpush3.bf16.msra.mxu1 %v2168_v9  ;;  %v2180_v12 = vld [vmem:[%s2139_s20 + $0x20] ss:$12 sps:$4 sm:$0xff]   ;;  %v2193_v15 = vld [vmem:[%s2139_s20 + $0x38] ss:$12 sps:$4 sm:$0xff]   ;;  %s1483_s23 = scalar_lea.vmem %s2291_s28, %s1482_s22  ;;  %s1494_s6 = scalar_lea.vmem %s2291_s28, %s1630_s5 }
  0x17   : > { %1734 = vmatprep.subr.bf16.mxu1 %v2081_v0  ;;  %v2184_v13 = vld [vmem:[%s2139_s20 + $0x60] ss:$12 sps:$4 sm:$0xff]   ;;  %v2188_v14 = vld [vmem:[%s2139_s20 + $0x7c] ss:$12 sps:$4 sm:$0xff]   ;;  %v2198_v16 = vld [vmem:[%s2139_s20 + $0x78] ss:$12 sps:$4 sm:$0xff]  }
  0x18   : > { %v2202_v17 = vld [vmem:[%s2139_s20 + $0x94] ss:$12 sps:$4 sm:$0xff]   ;;  %v2206_v18 = vld [vmem:[%s2139_s20 + $0x50] ss:$12 sps:$4 sm:$0xff]   ;;  %v2215_v20 = vld [vmem:[%s2139_s20 + $0xac] ss:$12 sps:$4 sm:$0xff]  }
  0x19   : > { %493 = vmatpush1.bf16.msra.mxu0 %v2153_v5  ;;  %v2211_v19 = vld [vmem:[%s2139_s20 + $0x90] ss:$12 sps:$4 sm:$0xff]   ;;  %v2219_v21 = vld [vmem:[%s2139_s20 + $0x68] ss:$12 sps:$4 sm:$0xff]   ;;  %v2229_v23 = vld [vmem:[%s2139_s20 + $0x80] ss:$12 sps:$4 sm:$0xff]  }
  0x1a   : > { %494 = vmatprep.subr.bf16.mxu0 %v2157_v6  ;;  %1735 = vmatpush3.bf16.msra.mxu1 %v2180_v12  ;;  %v2224_v22 = vld [vmem:[%s2139_s20 + $0xa8] ss:$12 sps:$4 sm:$0xff]   ;;  %v2235_v24 = vld [vmem:[%s2139_s20 + $0x98] ss:$12 sps:$4 sm:$0xff]   ;;  %v2243_v26 = vld [vmem:[%s2139_s20 + $0xb0] ss:$12 sps:$4 sm:$0xff]  }
  0x1b   : > { %1736 = vmatprep.subr.bf16.mxu1 %v2081_v0  ;;  %v336_v30 = vld [vmem:[%s279_s24] sm:$0x7]  ;;  %v343_v43 = vld [vmem:[%s341_s29 + $0x8] sm:$0xff]  ;;  %v344_v57 = vld [vmem:[%s341_s29 + $0x10] sm:$0xff]  ;;  %s1611_s17 = smul.u32 72, %s2071_s12  ;;  %s1624_s24 = sshll.u32 %s2071_s12, 2 }
  0x1c   : > { %v2294_v31 = vrot.slane %v336_v30, %v349_v29  ;;  %v342_v33 = vld [vmem:[%s341_s29] sm:$0xff]  ;;  %v2297_v39 = vrot.slane %v336_v30, %v353_v32  ;;  %v2300_v53 = vrot.slane %v336_v30, %v357_v52  ;;  %v1604_v29 = vld [vmem:[%s1468_s10 + $0x18] sm:$0xff]  ;;  %v1606_v52 = vld [vmem:[%s1468_s10 + $0x28] sm:$0xff]  ;;  %s1486_s25 = scalar_lea.vmem %s2308_s7, %s1624_s24  ;;  %s936_s29 = scalar_lea.vmem %s2291_s28, %s1659_s27 }
  0x1d   : > { %495 = vmatpush1.bf16.msra.mxu0 %v2161_v7  ;;  %s1476_s18 = scalar_lea.vmem %s2291_s28, %s1611_s17  ;;  %s1629_s30 = sshll.u32 %s933_s26, 2 }
  0x1e   : > { %496 = vmatprep.subr.bf16.mxu0 %v2165_v8  ;;  %1737 = vmatpush3.bf16.msra.mxu1 %v2193_v15  ;;  %s1043_s4 = scalar_lea.vmem %s2308_s7, %s1629_s30  ;;  %s1646_s17 = smul.u32 4294967128, %s2071_s12 }
  0x1f   : > { %1738 = vmatprep.subr.bf16.mxu1 %v2081_v0 }
  0x21   : > { %497 = vmatpush1.bf16.msra.mxu0 %v2172_v10 }
  0x22   : > { %498 = vmatprep.subr.bf16.mxu0 %v2175_v11  ;;  %1739 = vmatpush3.bf16.msra.mxu1 %v2206_v18 }
  0x23   : > { %1740 = vmatprep.subr.bf16.mxu1 %v2081_v0 }
  0x25   : > { %499 = vmatpush1.bf16.msra.mxu0 %v2184_v13 }
  0x26   : > { %500 = vmatprep.subr.bf16.mxu0 %v2188_v14  ;;  %1741 = vmatpush3.bf16.msra.mxu1 %v2219_v21 }
  0x27   : > { %1742 = vmatprep.subr.bf16.mxu1 %v2081_v0 }
  0x29   : > { %501 = vmatpush1.bf16.msra.mxu0 %v2198_v16 }
  0x2a   : > { %502 = vmatprep.subr.bf16.mxu0 %v2202_v17  ;;  %1743 = vmatpush3.bf16.msra.mxu1 %v2229_v23 }
  0x2b   : > { %1744 = vmatprep.subr.bf16.mxu1 %v2081_v0 }
  0x2d   : > { %503 = vmatpush1.bf16.msra.mxu0 %v2211_v19 }
  0x2e   : > { %504 = vmatprep.subr.bf16.mxu0 %v2215_v20  ;;  %1745 = vmatpush3.bf16.msra.mxu1 %v2235_v24 }
  0x2f   : > { %1746 = vmatprep.subr.bf16.mxu1 %v2081_v0 }
  0x31   : > { %505 = vmatpush1.bf16.msra.mxu0 %v2224_v22 }
  0x32   : > { %603 = vmatprep.subr.bf16.mxu0 %v2142_v2  ;;  %1747 = vmatpush3.bf16.msra.mxu1 %v2243_v26 }
  0x33   : > { %1752 = vmatprep.subr.bf16.mxu1 %v2081_v0 }
  0x34   : > { %523 = vmatmul.mubr.bf16.vlgmr.msra.gmra.mrb[0].mxu0 %v2084_v25 }
  0x35   : > { %604 = vmatpush1.bf16.msra.mxu0 %v2145_v3  ;;  %635 = vmatprep.mubr.bf16.mxu0 %v2082_v1 }
  0x36   : > { %605 = vmatprep.subr.bf16.mxu0 %v2149_v4  ;;  %1749 = vmatmul.mubr.bf16.vlgmr.msra.gmra.mrb[0].mxu1 %v2084_v25 }
  0x37   : > { %1753 = vmatpush3.bf16.msra.mxu1 %v2168_v9  ;;  %1768 = vmatprep.mubr.msk.bf16.mxu1 %vm2083_vm0, %v2081_v0 }
  0x38   : > { %1754 = vmatprep.subr.bf16.mxu1 %v2081_v0 }
  0x39   : > { %606 = vmatpush1.bf16.msra.mxu0 %v2153_v5 }
  0x3a   : > { %607 = vmatprep.subr.bf16.mxu0 %v2157_v6 }
  0x3b   : > { %1755 = vmatpush3.bf16.msra.mxu1 %v2180_v12 }
  0x3c   : > { %1756 = vmatprep.subr.bf16.mxu1 %v2081_v0 }
  0x3d   : > { %608 = vmatpush1.bf16.msra.mxu0 %v2161_v7 }
  0x3e   : > { %609 = vmatprep.subr.bf16.mxu0 %v2165_v8 }
  0x3f   : > { %1757 = vmatpush3.bf16.msra.mxu1 %v2193_v15 }
  0x40   : > { %1758 = vmatprep.subr.bf16.mxu1 %v2081_v0 }
  0x41   : > { %610 = vmatpush1.bf16.msra.mxu0 %v2172_v10 }
  0x42   : > { %611 = vmatprep.subr.bf16.mxu0 %v2175_v11 }
  0x43   : > { %1759 = vmatpush3.bf16.msra.mxu1 %v2206_v18 }
  0x44   : > { %1760 = vmatprep.subr.bf16.mxu1 %v2081_v0 }
  0x45   : > { %612 = vmatpush1.bf16.msra.mxu0 %v2184_v13 }
  0x46   : > { %613 = vmatprep.subr.bf16.mxu0 %v2188_v14 }
  0x47   : > { %1761 = vmatpush3.bf16.msra.mxu1 %v2219_v21 }
  0x48   : > { %1762 = vmatprep.subr.bf16.mxu1 %v2081_v0 }
  0x49   : > { %614 = vmatpush1.bf16.msra.mxu0 %v2198_v16 }
  0x4a   : > { %615 = vmatprep.subr.bf16.mxu0 %v2202_v17 }
  0x4b   : > { %1763 = vmatpush3.bf16.msra.mxu1 %v2229_v23 }
  0x4c   : > { %1764 = vmatprep.subr.bf16.mxu1 %v2081_v0 }
  0x4d   : > { %616 = vmatpush1.bf16.msra.mxu0 %v2211_v19 }
  0x4e   : > { %617 = vmatprep.subr.bf16.mxu0 %v2215_v20 }
  0x4f   : > { %1765 = vmatpush3.bf16.msra.mxu1 %v2235_v24 }
  0x50   : > { %1766 = vmatprep.subr.bf16.mxu1 %v2081_v0 }
  0x51   : > { %618 = vmatpush1.bf16.msra.mxu0 %v2224_v22 }
  0x52   : > { %716 = vmatprep.subr.bf16.mxu0 %v2142_v2 }
  0x53   : > { %1767 = vmatpush3.bf16.msra.mxu1 %v2243_v26 }
  0x54   : > { %1772 = vmatprep.subr.bf16.mxu1 %v2081_v0 }
 0x107   : > { %v524_v34 = vpop.f32.mrb[0].mxu0 }
 0x108   : > { %v525_v35 = vadd.f32 %v524_v34, %v2294_v31  ;;  %v526_v36 = vpop.f32.mrb[1].mxu0 }
 0x109   : > { %v528_v37 = vpop.f32.mrb[2].mxu0  ;;  %v527_v42 = vadd.f32 %v526_v36, %v2297_v39  ;;  %v565_v44 = vpop.f32.mrb[0].mxu1 }
 0x10a   : > { %v571_v38 = vadd.f32 %v525_v35, %v342_v33  ;;  %v529_v40 = vpop.f32.mrb[3].mxu0  ;;  %v1750_v45 = vpop.f32.mrb[1].mxu1  ;;  %v566_v54 = vadd.f32 %v565_v44, %v2300_v53  ;;  %v1605_v44 = vld [vmem:[%s1468_s10 + $0x20] sm:$0xff]  ;;  %s1638_s10 = smul.u32 4294967176, %s2071_s12 }
 0x10b   : > { %v578_v46 = vadd.f32 %v527_v42, %v343_v43  ;;  %v568_v47 = vpop.f32.mrb[2].mxu1 }
 0x10c   : > { %v1600_v41 = vmul.f32 -1.442695, %v571_v38  ;;  %v1751_v48 = vpop.f32.mrb[3].mxu1  ;;  %s1502_s11 = scalar_lea.vmem %s2291_s28, %s1638_s10 }
 0x10d   : > { %v1601_v49 = vmul.f32 -1.442695, %v578_v46 }
 0x10e   : > { %1954 = vpow2.f32 %v1600_v41 }
 0x10f   : > { %1956 = vpow2.f32 %v1601_v49 }
 0x118   : > { %v1955_v50 = vpop.eup %1954 }
 0x119   : > { %v575_v51 = vadd.f32 1.0, %v1955_v50  ;;  %v1957_v55 = vpop.eup %1956 }
 0x11a   : > { %v582_v59 = vadd.f32 1.0, %v1957_v55 }
 0x11b   : > { %1958 = vrcp.f32 %v575_v51 }
 0x125   : > { %v1959_v56 = vpop.eup %1958 }
 0x126   : > { %v585_v58 = vmul.f32 %v1959_v56, %v566_v54 }
 0x128   : > { %v586_v60 = vadd.f32 %v585_v58, %v344_v57 }
 0x12a   : > { %1960 = vtanh.f32 %v586_v60 }
 0x12b   : > { %1962 = vrcp.f32 %v582_v59 }
 0x134   : > { %v1961_v61 = vpop.eup %1960 }
 0x135   : > { %v588_v62 = vsub.f32 0.0, %v1961_v61  ;;  %v1963_v63 = vpop.eup %1962 }
 0x137   : > { %v589_v25 = vmul.f32 %v1963_v63, %v588_v62  ;;  %v1612_v63 = vld [vmem:[%s1476_s18 + $0x30] sm:$0xff] }
 0x139   : > { %v2310_v27 = vadd.f32 %v1961_v61, %v589_v25 }
 0x13b   : > { %v591_v28 = vpack.c.bf16 %v2310_v27, %v2310_v27 }
 0x13d   : > { %594 = vst [vmem:[%s593_s8] sm:$0xf] %v591_v28  ;;  %636 = vmatmul.mubr.bf16.vlgmr.msra.gmra.mrb[4].mxu0 %v591_v28  ;;  %1769 = vmatmul.mubr.bf16.vlgmr.msra.gmra.mrb[4].mxu1 %v591_v28  ;;  %s1636_s8 = smul.u32 4294967284, %s2071_s12 }
 0x13e   : > { %717 = vmatpush1.bf16.msra.mxu0 %v2145_v3  ;;  %1773 = vmatpush3.bf16.msra.mxu1 %v2168_v9 }
 0x13f   : > { %718 = vmatprep.subr.bf16.mxu0 %v2149_v4  ;;  %1774 = vmatprep.subr.bf16.mxu1 %v2081_v0  ;;  %s1498_s9 = scalar_lea.vmem %s2308_s7, %s1636_s8 }
 0x140   : > { %748 = vmatprep.mubr.bf16.mxu0 %v2082_v1  ;;  %1788 = vmatprep.mubr.msk.bf16.mxu1 %vm2083_vm0, %v2081_v0 }
 0x142   : > { %719 = vmatpush1.bf16.msra.mxu0 %v2153_v5  ;;  %1775 = vmatpush3.bf16.msra.mxu1 %v2180_v12 }
 0x143   : > { %720 = vmatprep.subr.bf16.mxu0 %v2157_v6  ;;  %1776 = vmatprep.subr.bf16.mxu1 %v2081_v0 }
 0x146   : > { %721 = vmatpush1.bf16.msra.mxu0 %v2161_v7  ;;  %1777 = vmatpush3.bf16.msra.mxu1 %v2193_v15 }
 0x147   : > { %722 = vmatprep.subr.bf16.mxu0 %v2165_v8  ;;  %1778 = vmatprep.subr.bf16.mxu1 %v2081_v0 }
 0x14a   : > { %723 = vmatpush1.bf16.msra.mxu0 %v2172_v10  ;;  %1779 = vmatpush3.bf16.msra.mxu1 %v2206_v18 }
 0x14b   : > { %724 = vmatprep.subr.bf16.mxu0 %v2175_v11  ;;  %1780 = vmatprep.subr.bf16.mxu1 %v2081_v0 }
 0x14e   : > { %725 = vmatpush1.bf16.msra.mxu0 %v2184_v13  ;;  %1781 = vmatpush3.bf16.msra.mxu1 %v2219_v21 }
 0x14f   : > { %726 = vmatprep.subr.bf16.mxu0 %v2188_v14  ;;  %1782 = vmatprep.subr.bf16.mxu1 %v2081_v0 }
 0x152   : > { %727 = vmatpush1.bf16.msra.mxu0 %v2198_v16  ;;  %1783 = vmatpush3.bf16.msra.mxu1 %v2229_v23 }
 0x153   : > { %728 = vmatprep.subr.bf16.mxu0 %v2202_v17  ;;  %1784 = vmatprep.subr.bf16.mxu1 %v2081_v0 }
 0x156   : > { %729 = vmatpush1.bf16.msra.mxu0 %v2211_v19  ;;  %1785 = vmatpush3.bf16.msra.mxu1 %v2235_v24 }
 0x157   : > { %730 = vmatprep.subr.bf16.mxu0 %v2215_v20  ;;  %1786 = vmatprep.subr.bf16.mxu1 %v2081_v0 }
 0x15a   : > { %731 = vmatpush1.bf16.msra.mxu0 %v2224_v22  ;;  %1787 = vmatpush3.bf16.msra.mxu1 %v2243_v26 }
 0x15b   : > { %828 = vmatprep.subr.bf16.mxu0 %v2142_v2  ;;  %1792 = vmatprep.subr.bf16.mxu1 %v2081_v0 }
 0x210   : > { %v637_v30 = vpop.f32.mrb[4].mxu0  ;;  %v678_v32 = vpop.f32.mrb[4].mxu1 }
 0x211   : > { %v638_v33 = vadd.f32 %v637_v30, %v2294_v31  ;;  %v639_v34 = vpop.f32.mrb[5].mxu0  ;;  %v1770_v35 = vpop.f32.mrb[5].mxu1  ;;  %v679_v50 = vadd.f32 %v678_v32, %v2300_v53 }
 0x212   : > { %v641_v36 = vpop.f32.mrb[6].mxu0  ;;  %v681_v37 = vpop.f32.mrb[6].mxu1  ;;  %v640_v43 = vadd.f32 %v639_v34, %v2297_v39 }
 0x213   : > { %v684_v38 = vadd.f32 %v1604_v29, %v638_v33  ;;  %v642_v40 = vpop.f32.mrb[7].mxu0  ;;  %v1771_v41 = vpop.f32.mrb[7].mxu1 }
 0x214   : > { %v691_v45 = vadd.f32 %v1605_v44, %v640_v43  ;;  %v1613_v40 = vld [vmem:[%s1476_s18 + $0x38] sm:$0xff] }
 0x215   : > { %v1607_v42 = vmul.f32 -1.442695, %v684_v38 }
 0x216   : > { %v1608_v46 = vmul.f32 -1.442695, %v691_v45 }
 0x217   : > { %1964 = vpow2.f32 %v1607_v42 }
 0x218   : > { %1966 = vpow2.f32 %v1608_v46 }
 0x221   : > { %v1965_v47 = vpop.eup %1964 }
 0x222   : > { %v688_v48 = vadd.f32 1.0, %v1965_v47  ;;  %v1967_v49 = vpop.eup %1966 }
 0x223   : > { %v695_v56 = vadd.f32 1.0, %v1967_v49 }
 0x224   : > { %1968 = vrcp.f32 %v688_v48  ;;  %v1614_v48 = vld [vmem:[%s1476_s18 + $0x40] sm:$0xff]  ;;  %s1510_s18 = scalar_lea.vmem %s2291_s28, %s1646_s17  ;;  %s1652_s28 = smul.u32 4294967268, %s2071_s12 }
 0x226   : > { %s1514_s19 = scalar_lea.vmem %s2308_s7, %s1652_s28 }
 0x22e   : > { %v1969_v51 = vpop.eup %1968 }
 0x22f   : > { %v698_v54 = vmul.f32 %v1969_v51, %v679_v50 }
 0x231   : > { %v699_v55 = vadd.f32 %v1606_v52, %v698_v54 }
 0x233   : > { %1970 = vtanh.f32 %v699_v55 }
 0x234   : > { %1972 = vrcp.f32 %v695_v56 }
 0x23d   : > { %v1971_v57 = vpop.eup %1970 }
 0x23e   : > { %v701_v58 = vsub.f32 %v2310_v27, %v1971_v57  ;;  %v1973_v59 = vpop.eup %1972 }
 0x240   : > { %v702_v60 = vmul.f32 %v1973_v59, %v701_v58  ;;  %v1619_v59 = vld [vmem:[%s1483_s23 + $0x48] sm:$0xff] }
 0x242   : > { %v2357_v61 = vadd.f32 %v1971_v57, %v702_v60 }
 0x244   : > { %v704_v62 = vpack.c.bf16 %v2357_v61, %v2357_v61 }
 0x246   : > { %1610 = vst [vmem:[%s1472_s16 + $0x4] sm:$0xf] %v704_v62  ;;  %749 = vmatmul.mubr.bf16.vlgmr.msra.gmra.mrb[8].mxu0 %v704_v62  ;;  %1789 = vmatmul.mubr.bf16.vlgmr.msra.gmra.mrb[8].mxu1 %v704_v62 }
 0x247   : > { %829 = vmatpush1.bf16.msra.mxu0 %v2145_v3  ;;  %1793 = vmatpush3.bf16.msra.mxu1 %v2168_v9 }
 0x248   : > { %830 = vmatprep.subr.bf16.mxu0 %v2149_v4  ;;  %1794 = vmatprep.subr.bf16.mxu1 %v2081_v0 }
 0x249   : > { %860 = vmatprep.mubr.bf16.mxu0 %v2082_v1  ;;  %1808 = vmatprep.mubr.msk.bf16.mxu1 %vm2083_vm0, %v2081_v0 }
 0x24b   : > { %831 = vmatpush1.bf16.msra.mxu0 %v2153_v5  ;;  %1795 = vmatpush3.bf16.msra.mxu1 %v2180_v12 }
 0x24c   : > { %832 = vmatprep.subr.bf16.mxu0 %v2157_v6  ;;  %1796 = vmatprep.subr.bf16.mxu1 %v2081_v0 }
 0x24f   : > { %833 = vmatpush1.bf16.msra.mxu0 %v2161_v7  ;;  %1797 = vmatpush3.bf16.msra.mxu1 %v2193_v15 }
 0x250   : > { %834 = vmatprep.subr.bf16.mxu0 %v2165_v8  ;;  %1798 = vmatprep.subr.bf16.mxu1 %v2081_v0 }
 0x253   : > { %835 = vmatpush1.bf16.msra.mxu0 %v2172_v10  ;;  %1799 = vmatpush3.bf16.msra.mxu1 %v2206_v18 }
 0x254   : > { %836 = vmatprep.subr.bf16.mxu0 %v2175_v11  ;;  %1800 = vmatprep.subr.bf16.mxu1 %v2081_v0 }
 0x257   : > { %837 = vmatpush1.bf16.msra.mxu0 %v2184_v13  ;;  %1801 = vmatpush3.bf16.msra.mxu1 %v2219_v21 }
 0x258   : > { %838 = vmatprep.subr.bf16.mxu0 %v2188_v14  ;;  %1802 = vmatprep.subr.bf16.mxu1 %v2081_v0 }
 0x25b   : > { %839 = vmatpush1.bf16.msra.mxu0 %v2198_v16  ;;  %1803 = vmatpush3.bf16.msra.mxu1 %v2229_v23 }
 0x25c   : > { %840 = vmatprep.subr.bf16.mxu0 %v2202_v17  ;;  %1804 = vmatprep.subr.bf16.mxu1 %v2081_v0 }
 0x25f   : > { %841 = vmatpush1.bf16.msra.mxu0 %v2211_v19  ;;  %1805 = vmatpush3.bf16.msra.mxu1 %v2235_v24 }
 0x260   : > { %842 = vmatprep.subr.bf16.mxu0 %v2215_v20  ;;  %1806 = vmatprep.subr.bf16.mxu1 %v2081_v0 }
 0x263   : > { %843 = vmatpush1.bf16.msra.mxu0 %v2224_v22  ;;  %1807 = vmatpush3.bf16.msra.mxu1 %v2243_v26 }
 0x264   : > { %940 = vmatprep.subr.bf16.mxu0 %v2142_v2  ;;  %1812 = vmatprep.subr.bf16.mxu1 %v2081_v0 }
 0x319   : > { %v750_v25 = vpop.f32.mrb[8].mxu0  ;;  %v791_v27 = vpop.f32.mrb[8].mxu1 }
 0x31a   : > { %v751_v28 = vadd.f32 %v750_v25, %v2294_v31  ;;  %v752_v29 = vpop.f32.mrb[9].mxu0  ;;  %v1790_v30 = vpop.f32.mrb[9].mxu1  ;;  %v792_v46 = vadd.f32 %v791_v27, %v2300_v53 }
 0x31b   : > { %v754_v32 = vpop.f32.mrb[10].mxu0  ;;  %v794_v33 = vpop.f32.mrb[10].mxu1  ;;  %v753_v38 = vadd.f32 %v752_v29, %v2297_v39 }
 0x31c   : > { %v797_v34 = vadd.f32 %v1612_v63, %v751_v28  ;;  %v755_v35 = vpop.f32.mrb[11].mxu0  ;;  %v1791_v36 = vpop.f32.mrb[11].mxu1 }
 0x31d   : > { %v804_v41 = vadd.f32 %v1613_v40, %v753_v38  ;;  %v1620_v35 = vld [vmem:[%s1483_s23 + $0x50] sm:$0xff] }
 0x31e   : > { %v1615_v37 = vmul.f32 -1.442695, %v797_v34 }
 0x31f   : > { %v1616_v42 = vmul.f32 -1.442695, %v804_v41 }
 0x320   : > { %1974 = vpow2.f32 %v1615_v37 }
 0x321   : > { %1976 = vpow2.f32 %v1616_v42 }
 0x32a   : > { %v1975_v43 = vpop.eup %1974 }
 0x32b   : > { %v801_v44 = vadd.f32 1.0, %v1975_v43  ;;  %v1977_v45 = vpop.eup %1976 }
 0x32c   : > { %v808_v51 = vadd.f32 1.0, %v1977_v45 }
 0x32d   : > { %1978 = vrcp.f32 %v801_v44  ;;  %v1621_v44 = vld [vmem:[%s1483_s23 + $0x58] sm:$0xff] }
 0x337   : > { %v1979_v47 = vpop.eup %1978 }
 0x338   : > { %v811_v49 = vmul.f32 %v1979_v47, %v792_v46 }
 0x33a   : > { %v812_v50 = vadd.f32 %v1614_v48, %v811_v49 }
 0x33c   : > { %1980 = vtanh.f32 %v812_v50 }
 0x33d   : > { %1982 = vrcp.f32 %v808_v51 }
 0x346   : > { %v1981_v52 = vpop.eup %1980 }
 0x347   : > { %v814_v54 = vsub.f32 %v2357_v61, %v1981_v52  ;;  %v1983_v55 = vpop.eup %1982 }
 0x349   : > { %v815_v56 = vmul.f32 %v1983_v55, %v814_v54  ;;  %v937_v55 = vld [vmem:[%s936_s29] sm:$0xff] }
 0x34b   : > { %v2404_v57 = vadd.f32 %v1981_v52, %v815_v56 }
 0x34d   : > { %v817_v58 = vpack.c.bf16 %v2404_v57, %v2404_v57 }
 0x34f   : > { %1618 = vst [vmem:[%s1480_s21 + $0x8] sm:$0xf] %v817_v58  ;;  %861 = vmatmul.mubr.bf16.vlgmr.msra.gmra.mrb[12].mxu0 %v817_v58  ;;  %1809 = vmatmul.mubr.bf16.vlgmr.msra.gmra.mrb[12].mxu1 %v817_v58 }
 0x350   : > { %941 = vmatpush1.bf16.msra.mxu0 %v2145_v3  ;;  %1813 = vmatpush3.bf16.msra.mxu1 %v2168_v9 }
 0x351   : > { %942 = vmatprep.subr.bf16.mxu0 %v2149_v4  ;;  %1814 = vmatprep.subr.bf16.mxu1 %v2081_v0 }
 0x352   : > { %972 = vmatprep.mubr.bf16.mxu0 %v2082_v1  ;;  %1828 = vmatprep.mubr.msk.bf16.mxu1 %vm2083_vm0, %v2081_v0 }
 0x354   : > { %943 = vmatpush1.bf16.msra.mxu0 %v2153_v5  ;;  %1815 = vmatpush3.bf16.msra.mxu1 %v2180_v12 }
 0x355   : > { %944 = vmatprep.subr.bf16.mxu0 %v2157_v6  ;;  %1816 = vmatprep.subr.bf16.mxu1 %v2081_v0 }
 0x358   : > { %945 = vmatpush1.bf16.msra.mxu0 %v2161_v7  ;;  %1817 = vmatpush3.bf16.msra.mxu1 %v2193_v15 }
 0x359   : > { %946 = vmatprep.subr.bf16.mxu0 %v2165_v8  ;;  %1818 = vmatprep.subr.bf16.mxu1 %v2081_v0 }
 0x35c   : > { %947 = vmatpush1.bf16.msra.mxu0 %v2172_v10  ;;  %1819 = vmatpush3.bf16.msra.mxu1 %v2206_v18 }
 0x35d   : > { %948 = vmatprep.subr.bf16.mxu0 %v2175_v11  ;;  %1820 = vmatprep.subr.bf16.mxu1 %v2081_v0 }
 0x360   : > { %949 = vmatpush1.bf16.msra.mxu0 %v2184_v13  ;;  %1821 = vmatpush3.bf16.msra.mxu1 %v2219_v21 }
 0x361   : > { %950 = vmatprep.subr.bf16.mxu0 %v2188_v14  ;;  %1822 = vmatprep.subr.bf16.mxu1 %v2081_v0 }
 0x364   : > { %951 = vmatpush1.bf16.msra.mxu0 %v2198_v16  ;;  %1823 = vmatpush3.bf16.msra.mxu1 %v2229_v23 }
 0x365   : > { %952 = vmatprep.subr.bf16.mxu0 %v2202_v17  ;;  %1824 = vmatprep.subr.bf16.mxu1 %v2081_v0 }
 0x368   : > { %953 = vmatpush1.bf16.msra.mxu0 %v2211_v19  ;;  %1825 = vmatpush3.bf16.msra.mxu1 %v2235_v24 }
 0x369   : > { %954 = vmatprep.subr.bf16.mxu0 %v2215_v20  ;;  %1826 = vmatprep.subr.bf16.mxu1 %v2081_v0 }
 0x36c   : > { %955 = vmatpush1.bf16.msra.mxu0 %v2224_v22  ;;  %1827 = vmatpush3.bf16.msra.mxu1 %v2243_v26 }
 0x36d   : > { %1053 = vmatprep.subr.bf16.mxu0 %v2142_v2  ;;  %1832 = vmatprep.subr.bf16.mxu1 %v2081_v0 }
 0x422   : > { %v862_v60 = vpop.f32.mrb[12].mxu0  ;;  %v903_v61 = vpop.f32.mrb[12].mxu1 }
 0x423   : > { %v863_v62 = vadd.f32 %v862_v60, %v2294_v31  ;;  %v864_v63 = vpop.f32.mrb[13].mxu0  ;;  %v1810_v25 = vpop.f32.mrb[13].mxu1  ;;  %v904_v42 = vadd.f32 %v903_v61, %v2300_v53 }
 0x424   : > { %v866_v27 = vpop.f32.mrb[14].mxu0  ;;  %v906_v28 = vpop.f32.mrb[14].mxu1  ;;  %v865_v34 = vadd.f32 %v864_v63, %v2297_v39 }
 0x425   : > { %v909_v29 = vadd.f32 %v1619_v59, %v863_v62  ;;  %v867_v30 = vpop.f32.mrb[15].mxu0  ;;  %v1811_v32 = vpop.f32.mrb[15].mxu1 }
 0x426   : > { %v916_v36 = vadd.f32 %v1620_v35, %v865_v34 }
 0x427   : > { %v1622_v33 = vmul.f32 -1.442695, %v909_v29  ;;  %v938_v29 = vld [vmem:[%s936_s29 + $0x8] sm:$0xff] }
 0x428   : > { %v1623_v37 = vmul.f32 -1.442695, %v916_v36 }
 0x429   : > { %1984 = vpow2.f32 %v1622_v33 }
 0x42a   : > { %1986 = vpow2.f32 %v1623_v37 }
 0x433   : > { %v1985_v38 = vpop.eup %1984 }
 0x434   : > { %v913_v40 = vadd.f32 1.0, %v1985_v38  ;;  %v1987_v41 = vpop.eup %1986  ;;  %v939_v38 = vld [vmem:[%s936_s29 + $0x10] sm:$0xff] }
 0x435   : > { %v920_v47 = vadd.f32 1.0, %v1987_v41 }
 0x436   : > { %1988 = vrcp.f32 %v913_v40 }
 0x440   : > { %v1989_v43 = vpop.eup %1988 }
 0x441   : > { %v923_v45 = vmul.f32 %v1989_v43, %v904_v42 }
 0x443   : > { %v924_v46 = vadd.f32 %v1621_v44, %v923_v45 }
 0x445   : > { %1990 = vtanh.f32 %v924_v46 }
 0x446   : > { %1992 = vrcp.f32 %v920_v47 }
 0x44f   : > { %v1991_v48 = vpop.eup %1990 }
 0x450   : > { %v926_v49 = vsub.f32 %v2404_v57, %v1991_v48  ;;  %v1993_v50 = vpop.eup %1992 }
 0x452   : > { %v927_v51 = vmul.f32 %v1993_v50, %v926_v49  ;;  %v1633_v49 = vld [vmem:[%s1494_s6 + $0x88] sm:$0xff] }
 0x454   : > { %v2451_v52 = vadd.f32 %v1991_v48, %v927_v51 }
 0x456   : > { %v929_v54 = vpack.c.bf16 %v2451_v52, %v2451_v52 }
 0x458   : > { %1625 = vst [vmem:[%s1486_s25 + $0xc] sm:$0xf] %v929_v54  ;;  %973 = vmatmul.mubr.bf16.vlgmr.msra.gmra.mrb[16].mxu0 %v929_v54  ;;  %1829 = vmatmul.mubr.bf16.vlgmr.msra.gmra.mrb[16].mxu1 %v929_v54 }
 0x459   : > { %1054 = vmatpush1.bf16.msra.mxu0 %v2145_v3  ;;  %1833 = vmatpush3.bf16.msra.mxu1 %v2168_v9 }
 0x45a   : > { %1055 = vmatprep.subr.bf16.mxu0 %v2149_v4  ;;  %1834 = vmatprep.subr.bf16.mxu1 %v2081_v0 }
 0x45b   : > { %1085 = vmatprep.mubr.bf16.mxu0 %v2082_v1  ;;  %1848 = vmatprep.mubr.msk.bf16.mxu1 %vm2083_vm0, %v2081_v0 }
 0x45d   : > { %1056 = vmatpush1.bf16.msra.mxu0 %v2153_v5  ;;  %1835 = vmatpush3.bf16.msra.mxu1 %v2180_v12 }
 0x45e   : > { %1057 = vmatprep.subr.bf16.mxu0 %v2157_v6  ;;  %1836 = vmatprep.subr.bf16.mxu1 %v2081_v0 }
 0x461   : > { %1058 = vmatpush1.bf16.msra.mxu0 %v2161_v7  ;;  %1837 = vmatpush3.bf16.msra.mxu1 %v2193_v15 }
 0x462   : > { %1059 = vmatprep.subr.bf16.mxu0 %v2165_v8  ;;  %1838 = vmatprep.subr.bf16.mxu1 %v2081_v0 }
 0x465   : > { %1060 = vmatpush1.bf16.msra.mxu0 %v2172_v10  ;;  %1839 = vmatpush3.bf16.msra.mxu1 %v2206_v18 }
 0x466   : > { %1061 = vmatprep.subr.bf16.mxu0 %v2175_v11  ;;  %1840 = vmatprep.subr.bf16.mxu1 %v2081_v0 }
 0x469   : > { %1062 = vmatpush1.bf16.msra.mxu0 %v2184_v13  ;;  %1841 = vmatpush3.bf16.msra.mxu1 %v2219_v21 }
 0x46a   : > { %1063 = vmatprep.subr.bf16.mxu0 %v2188_v14  ;;  %1842 = vmatprep.subr.bf16.mxu1 %v2081_v0 }
 0x46d   : > { %1064 = vmatpush1.bf16.msra.mxu0 %v2198_v16  ;;  %1843 = vmatpush3.bf16.msra.mxu1 %v2229_v23 }
 0x46e   : > { %1065 = vmatprep.subr.bf16.mxu0 %v2202_v17  ;;  %1844 = vmatprep.subr.bf16.mxu1 %v2081_v0 }
 0x471   : > { %1066 = vmatpush1.bf16.msra.mxu0 %v2211_v19  ;;  %1845 = vmatpush3.bf16.msra.mxu1 %v2235_v24 }
 0x472   : > { %1067 = vmatprep.subr.bf16.mxu0 %v2215_v20  ;;  %1846 = vmatprep.subr.bf16.mxu1 %v2081_v0 }
 0x475   : > { %1068 = vmatpush1.bf16.msra.mxu0 %v2224_v22  ;;  %1847 = vmatpush3.bf16.msra.mxu1 %v2243_v26 }
 0x476   : > { %1166 = vmatprep.subr.bf16.mxu0 %v2142_v2  ;;  %1852 = vmatprep.subr.bf16.mxu1 %v2081_v0 }
 0x52b   : > { %v974_v56 = vpop.f32.mrb[16].mxu0  ;;  %v1015_v57 = vpop.f32.mrb[16].mxu1 }
 0x52c   : > { %v975_v58 = vadd.f32 %v974_v56, %v2294_v31  ;;  %v976_v59 = vpop.f32.mrb[17].mxu0  ;;  %v1830_v60 = vpop.f32.mrb[17].mxu1  ;;  %v1016_v36 = vadd.f32 %v1015_v57, %v2300_v53 }
 0x52d   : > { %v978_v61 = vpop.f32.mrb[18].mxu0  ;;  %v1018_v62 = vpop.f32.mrb[18].mxu1  ;;  %v977_v2 = vadd.f32 %v976_v59, %v2297_v39  ;;  %v2035_v60 = vld [vmem:[%s2139_s20] ss:$12 sps:$4 sm:$0xff]  }
 0x52e   : > { %v1021_v63 = vadd.f32 %v975_v58, %v937_v55  ;;  %v979_v25 = vpop.f32.mrb[19].mxu0  ;;  %v1831_v27 = vpop.f32.mrb[19].mxu1  ;;  %v2036_v61 = vld [vmem:[%s2139_s20 + $0x8] ss:$12 sps:$4 sm:$0xff]  }
 0x52f   : > { %v1028_v30 = vadd.f32 %v977_v2, %v938_v29  ;;  %v2037_v62 = vld [vmem:[%s2139_s20 + $0x1c] ss:$12 sps:$4 sm:$0xff]   ;;  %v2039_v25 = vld [vmem:[%s2139_s20 + $0x20] ss:$12 sps:$4 sm:$0xff]   ;;  %v2042_v2 = vld [vmem:[%s2139_s20 + $0x38] ss:$12 sps:$4 sm:$0xff]  }
 0x530   : > { %v1627_v28 = vmul.f32 -1.442695, %v1021_v63  ;;  %v2038_v63 = vld [vmem:[%s2139_s20 + $0x18] ss:$12 sps:$4 sm:$0xff]   ;;  %v2040_v27 = vld [vmem:[%s2139_s20 + $0x34] ss:$12 sps:$4 sm:$0xff]  }
 0x531   : > { %v1628_v32 = vmul.f32 -1.442695, %v1028_v30  ;;  %v2044_v29 = vld [vmem:[%s2139_s20 + $0x48] ss:$12 sps:$4 sm:$0xff]   ;;  %v2045_v30 = vld [vmem:[%s2139_s20 + $0x50] ss:$12 sps:$4 sm:$0xff]  }
 0x532   : > { %1994 = vpow2.f32 %v1627_v28  ;;  %v2041_v28 = vld [vmem:[%s2139_s20 + $0x30] ss:$12 sps:$4 sm:$0xff]  }
 0x533   : > { %1996 = vpow2.f32 %v1628_v32  ;;  %v2046_v32 = vld [vmem:[%s2139_s20 + $0x64] ss:$12 sps:$4 sm:$0xff]  }
 0x53c   : > { %v1995_v33 = vpop.eup %1994 }
 0x53d   : > { %v1025_v34 = vadd.f32 1.0, %v1995_v33  ;;  %v1997_v35 = vpop.eup %1996  ;;  %v2047_v33 = vld [vmem:[%s2139_s20 + $0x60] ss:$12 sps:$4 sm:$0xff]  }
 0x53e   : > { %v1032_v42 = vadd.f32 1.0, %v1997_v35  ;;  %v2049_v35 = vld [vmem:[%s2139_s20 + $0x7c] ss:$12 sps:$4 sm:$0xff]  }
 0x53f   : > { %1998 = vrcp.f32 %v1025_v34  ;;  %v2048_v34 = vld [vmem:[%s2139_s20 + $0x68] ss:$12 sps:$4 sm:$0xff]  }
 0x549   : > { %v1999_v37 = vpop.eup %1998 }
 0x54a   : > { %v1035_v40 = vmul.f32 %v1999_v37, %v1016_v36  ;;  %v2050_v36 = vld [vmem:[%s2139_s20 + $0x78] ss:$12 sps:$4 sm:$0xff]   ;;  %v2051_v37 = vld [vmem:[%s2139_s20 + $0x80] ss:$12 sps:$4 sm:$0xff]  }
 0x54c   : > { %v1036_v41 = vadd.f32 %v1035_v40, %v939_v38  ;;  %v2052_v38 = vld [vmem:[%s2139_s20 + $0x94] ss:$12 sps:$4 sm:$0xff]   ;;  %v2053_v40 = vld [vmem:[%s2139_s20 + $0x90] ss:$12 sps:$4 sm:$0xff]  }
 0x54e   : > { %2000 = vtanh.f32 %v1036_v41  ;;  %v2054_v41 = vld [vmem:[%s2139_s20 + $0x98] ss:$12 sps:$4 sm:$0xff]  }
 0x54f   : > { %2002 = vrcp.f32 %v1032_v42  ;;  %v2055_v42 = vld [vmem:[%s2139_s20 + $0xac] ss:$12 sps:$4 sm:$0xff]  }
 0x558   : > { %v2001_v43 = vpop.eup %2000 }
 0x559   : > { %v1038_v44 = vsub.f32 %v2451_v52, %v2001_v43  ;;  %v2003_v45 = vpop.eup %2002 }
 0x55b   : > { %v1039_v46 = vmul.f32 %v2003_v45, %v1038_v44  ;;  %v1639_v44 = vld [vmem:[%s1502_s11 + $0x90] sm:$0xff] }
 0x55d   : > { %v2501_v47 = vadd.f32 %v2001_v43, %v1039_v46  ;;  %v2056_v43 = vld [vmem:[%s2139_s20 + $0xa8] ss:$12 sps:$4 sm:$0xff]  }
 0x55f   : > { %v1041_v48 = vpack.c.bf16 %v2501_v47, %v2501_v47 }
 0x561   : > { %1044 = vst [vmem:[%s1043_s4] sm:$0xf] %v1041_v48  ;;  %1086 = vmatmul.mubr.bf16.vlgmr.msra.gmra.mrb[20].mxu0 %v1041_v48  ;;  %1849 = vmatmul.mubr.bf16.vlgmr.msra.gmra.mrb[20].mxu1 %v1041_v48 }
 0x562   : > { %1167 = vmatpush1.bf16.msra.mxu0 %v2145_v3  ;;  %1853 = vmatpush3.bf16.msra.mxu1 %v2168_v9  ;;  %v2034_v3 = vld [vmem:[%s2139_s20 + $0x4] ss:$12 sps:$4 sm:$0xff]  }
 0x563   : > { %1168 = vmatprep.subr.bf16.mxu0 %v2149_v4  ;;  %1854 = vmatprep.subr.bf16.mxu1 %v2081_v0  ;;  %v1631_v4 = vld [vmem:[%s1494_s6 + $0x78] sm:$0xff] }
 0x564   : > { %1198 = vmatprep.mubr.bf16.mxu0 %v2082_v1  ;;  %1868 = vmatprep.mubr.msk.bf16.mxu1 %vm2083_vm0, %v2081_v0 }
 0x566   : > { %1169 = vmatpush1.bf16.msra.mxu0 %v2153_v5  ;;  %1855 = vmatpush3.bf16.msra.mxu1 %v2180_v12 }
 0x567   : > { %1170 = vmatprep.subr.bf16.mxu0 %v2157_v6  ;;  %1856 = vmatprep.subr.bf16.mxu1 %v2081_v0 }
 0x56a   : > { %1171 = vmatpush1.bf16.msra.mxu0 %v2161_v7  ;;  %1857 = vmatpush3.bf16.msra.mxu1 %v2193_v15 }
 0x56b   : > { %1172 = vmatprep.subr.bf16.mxu0 %v2165_v8  ;;  %1858 = vmatprep.subr.bf16.mxu1 %v2081_v0 }
 0x56e   : > { %1173 = vmatpush1.bf16.msra.mxu0 %v2172_v10  ;;  %1859 = vmatpush3.bf16.msra.mxu1 %v2206_v18 }
 0x56f   : > { %1174 = vmatprep.subr.bf16.mxu0 %v2175_v11  ;;  %1860 = vmatprep.subr.bf16.mxu1 %v2081_v0 }
 0x572   : > { %1175 = vmatpush1.bf16.msra.mxu0 %v2184_v13  ;;  %1861 = vmatpush3.bf16.msra.mxu1 %v2219_v21 }
 0x573   : > { %1176 = vmatprep.subr.bf16.mxu0 %v2188_v14  ;;  %1862 = vmatprep.subr.bf16.mxu1 %v2081_v0 }
 0x576   : > { %1177 = vmatpush1.bf16.msra.mxu0 %v2198_v16  ;;  %1863 = vmatpush3.bf16.msra.mxu1 %v2229_v23 }
 0x577   : > { %1178 = vmatprep.subr.bf16.mxu0 %v2202_v17  ;;  %1864 = vmatprep.subr.bf16.mxu1 %v2081_v0  ;;  %v1632_v17 = vld [vmem:[%s1494_s6 + $0x80] sm:$0xff] }
 0x57a   : > { %1179 = vmatpush1.bf16.msra.mxu0 %v2211_v19  ;;  %1865 = vmatpush3.bf16.msra.mxu1 %v2235_v24 }
 0x57b   : > { %1180 = vmatprep.subr.bf16.mxu0 %v2215_v20  ;;  %1866 = vmatprep.subr.bf16.mxu1 %v2081_v0 }
 0x57e   : > { %1181 = vmatpush1.bf16.msra.mxu0 %v2224_v22  ;;  %1867 = vmatpush3.bf16.msra.mxu1 %v2243_v26 }
 0x57f   : > { %1279 = vmatprep.subr.bf16.mxu0 %v2034_v3  ;;  %1872 = vmatprep.subr.bf16.mxu1 %v2081_v0 }
 0x634   : > { %v1087_v5 = vpop.f32.mrb[20].mxu0  ;;  %v1128_v6 = vpop.f32.mrb[20].mxu1 }
 0x635   : > { %v1088_v7 = vadd.f32 %v1087_v5, %v2294_v31  ;;  %v1089_v8 = vpop.f32.mrb[21].mxu0  ;;  %v1850_v9 = vpop.f32.mrb[21].mxu1  ;;  %v1129_v23 = vadd.f32 %v1128_v6, %v2300_v53 }
 0x636   : > { %v1091_v10 = vpop.f32.mrb[22].mxu0  ;;  %v1131_v11 = vpop.f32.mrb[22].mxu1  ;;  %v1090_v16 = vadd.f32 %v1089_v8, %v2297_v39 }
 0x637   : > { %v1134_v12 = vadd.f32 %v1631_v4, %v1088_v7  ;;  %v1092_v13 = vpop.f32.mrb[23].mxu0  ;;  %v1851_v14 = vpop.f32.mrb[23].mxu1  ;;  %v1640_v10 = vld [vmem:[%s1502_s11 + $0x98] sm:$0xff] }
 0x638   : > { %v1141_v18 = vadd.f32 %v1632_v17, %v1090_v16  ;;  %v1641_v17 = vld [vmem:[%s1502_s11 + $0xa0] sm:$0xff] }
 0x639   : > { %v1634_v15 = vmul.f32 -1.442695, %v1134_v12 }
 0x63a   : > { %v1635_v19 = vmul.f32 -1.442695, %v1141_v18 }
 0x63b   : > { %2004 = vpow2.f32 %v1634_v15 }
 0x63c   : > { %2006 = vpow2.f32 %v1635_v19 }
 0x645   : > { %v2005_v20 = vpop.eup %2004 }
 0x646   : > { %v1138_v21 = vadd.f32 1.0, %v2005_v20  ;;  %v2007_v22 = vpop.eup %2006 }
 0x647   : > { %v1145_v52 = vadd.f32 1.0, %v2007_v22 }
 0x648   : > { %2008 = vrcp.f32 %v1138_v21 }
 0x652   : > { %v2009_v24 = vpop.eup %2008 }
 0x653   : > { %v1148_v50 = vmul.f32 %v2009_v24, %v1129_v23 }
 0x655   : > { %v1149_v51 = vadd.f32 %v1633_v49, %v1148_v50 }
 0x657   : > { %2010 = vtanh.f32 %v1149_v51  ;;  %v1647_v51 = vld [vmem:[%s1510_s18 + $0xa8] sm:$0xff] }
 0x658   : > { %2012 = vrcp.f32 %v1145_v52 }
 0x661   : > { %v2011_v54 = vpop.eup %2010 }
 0x662   : > { %v1151_v55 = vsub.f32 %v2501_v47, %v2011_v54  ;;  %v2013_v56 = vpop.eup %2012 }
 0x664   : > { %v1152_v57 = vmul.f32 %v2013_v56, %v1151_v55 }
 0x666   : > { %v2548_v58 = vadd.f32 %v2011_v54, %v1152_v57 }
 0x668   : > { %v1154_v59 = vpack.c.bf16 %v2548_v58, %v2548_v58 }
 0x66a   : > { %1637 = vst [vmem:[%s1498_s9 + $0x14] sm:$0xf] %v1154_v59  ;;  %1199 = vmatmul.mubr.bf16.vlgmr.msra.gmra.mrb[24].mxu0 %v1154_v59  ;;  %1869 = vmatmul.mubr.bf16.vlgmr.msra.gmra.mrb[24].mxu1 %v1154_v59 }
 0x66b   : > { %1280 = vmatpush1.bf16.msra.mxu0 %v2035_v60  ;;  %1873 = vmatpush3.bf16.msra.mxu1 %v2036_v61 }
 0x66c   : > { %1281 = vmatprep.subr.bf16.mxu0 %v2037_v62  ;;  %1874 = vmatprep.subr.bf16.mxu1 %v2081_v0 }
 0x66d   : > { %1311 = vmatprep.mubr.bf16.mxu0 %v2082_v1  ;;  %1888 = vmatprep.mubr.msk.bf16.mxu1 %vm2083_vm0, %v2081_v0  ;;  %v2043_v1 = vld [vmem:[%s2139_s20 + $0x4c] ss:$12 sps:$4 sm:$0xff]   ;;  %s1644_s20 = smul.u32 4294967276, %s2071_s12 }
 0x66f   : > { %1282 = vmatpush1.bf16.msra.mxu0 %v2038_v63  ;;  %1875 = vmatpush3.bf16.msra.mxu1 %v2039_v25  ;;  %s1506_s16 = scalar_lea.vmem %s2308_s7, %s1644_s20 }
 0x670   : > { %1283 = vmatprep.subr.bf16.mxu0 %v2040_v27  ;;  %1876 = vmatprep.subr.bf16.mxu1 %v2081_v0  ;;  %v1648_v27 = vld [vmem:[%s1510_s18 + $0xb0] sm:$0xff] }
 0x673   : > { %1284 = vmatpush1.bf16.msra.mxu0 %v2041_v28  ;;  %1877 = vmatpush3.bf16.msra.mxu1 %v2042_v2 }
 0x674   : > { %1285 = vmatprep.subr.bf16.mxu0 %v2043_v1  ;;  %1878 = vmatprep.subr.bf16.mxu1 %v2081_v0 }
 0x677   : > { %1286 = vmatpush1.bf16.msra.mxu0 %v2044_v29  ;;  %1879 = vmatpush3.bf16.msra.mxu1 %v2045_v30 }
 0x678   : > { %1287 = vmatprep.subr.bf16.mxu0 %v2046_v32  ;;  %1880 = vmatprep.subr.bf16.mxu1 %v2081_v0 }
 0x67b   : > { %1288 = vmatpush1.bf16.msra.mxu0 %v2047_v33  ;;  %1881 = vmatpush3.bf16.msra.mxu1 %v2048_v34  ;;  %v1649_v33 = vld [vmem:[%s1510_s18 + $0xb8] sm:$0xff] }
 0x67c   : > { %1289 = vmatprep.subr.bf16.mxu0 %v2049_v35  ;;  %1882 = vmatprep.subr.bf16.mxu1 %v2081_v0 }
 0x67f   : > { %1290 = vmatpush1.bf16.msra.mxu0 %v2050_v36  ;;  %1883 = vmatpush3.bf16.msra.mxu1 %v2051_v37 }
 0x680   : > { %1291 = vmatprep.subr.bf16.mxu0 %v2052_v38  ;;  %1884 = vmatprep.subr.bf16.mxu1 %v2081_v0 }
 0x683   : > { %1292 = vmatpush1.bf16.msra.mxu0 %v2053_v40  ;;  %1885 = vmatpush3.bf16.msra.mxu1 %v2054_v41 }
 0x684   : > { %1293 = vmatprep.subr.bf16.mxu0 %v2055_v42  ;;  %1886 = vmatprep.subr.bf16.mxu1 %v2081_v0 }
 0x687   : > { %1294 = vmatpush1.bf16.msra.mxu0 %v2056_v43  ;;  %1887 = vmatpush3.bf16.msra.mxu1 %v2243_v26 }
 0x73d   : > { %v1200_v45 = vpop.f32.mrb[24].mxu0  ;;  %v1241_v46 = vpop.f32.mrb[24].mxu1 }
 0x73e   : > { %v1201_v47 = vadd.f32 %v1200_v45, %v2294_v31  ;;  %v1202_v48 = vpop.f32.mrb[25].mxu0  ;;  %v1870_v3 = vpop.f32.mrb[25].mxu1  ;;  %v1242_v15 = vadd.f32 %v1241_v46, %v2300_v53 }
 0x73f   : > { %v1204_v4 = vpop.f32.mrb[26].mxu0  ;;  %v1244_v5 = vpop.f32.mrb[26].mxu1  ;;  %v1203_v0 = vadd.f32 %v1202_v48, %v2297_v39 }
 0x740   : > { %v1247_v6 = vadd.f32 %v1639_v44, %v1201_v47  ;;  %v1205_v7 = vpop.f32.mrb[27].mxu0  ;;  %v1871_v8 = vpop.f32.mrb[27].mxu1 }
 0x741   : > { %v1254_v26 = vadd.f32 %v1640_v10, %v1203_v0 }
 0x742   : > { %v1642_v9 = vmul.f32 -1.442695, %v1247_v6 }
 0x743   : > { %v1643_v11 = vmul.f32 -1.442695, %v1254_v26 }
 0x744   : > { %2014 = vpow2.f32 %v1642_v9 }
 0x745   : > { %2016 = vpow2.f32 %v1643_v11 }
 0x74e   : > { %v2015_v12 = vpop.eup %2014 }
 0x74f   : > { %v1251_v13 = vadd.f32 1.0, %v2015_v12  ;;  %v2017_v14 = vpop.eup %2016 }
 0x750   : > { %v1258_v20 = vadd.f32 1.0, %v2017_v14 }
 0x751   : > { %2018 = vrcp.f32 %v1251_v13 }
 0x75b   : > { %v2019_v16 = vpop.eup %2018 }
 0x75c   : > { %v1261_v18 = vmul.f32 %v2019_v16, %v1242_v15 }
 0x75e   : > { %v1262_v19 = vadd.f32 %v1641_v17, %v1261_v18 }
 0x760   : > { %2020 = vtanh.f32 %v1262_v19 }
 0x761   : > { %2022 = vrcp.f32 %v1258_v20 }
 0x76a   : > { %v2021_v21 = vpop.eup %2020 }
 0x76b   : > { %v1264_v22 = vsub.f32 %v2548_v58, %v2021_v21  ;;  %v2023_v23 = vpop.eup %2022 }
 0x76d   : > { %v1265_v24 = vmul.f32 %v2023_v23, %v1264_v22 }
 0x76f   : > { %v1266_v49 = vadd.f32 %v2021_v21, %v1265_v24 }
 0x771   : > { %v1267_v50 = vpack.c.bf16 %v1266_v49, %v1266_v49 }
 0x773   : > { %1645 = vst [vmem:[%s1506_s16 + $0x18] sm:$0xf] %v1267_v50  ;;  %1312 = vmatmul.mubr.bf16.vlgmr.msra.gmra.mrb[28].mxu0 %v1267_v50  ;;  %1889 = vmatmul.mubr.bf16.vlgmr.msra.gmra.mrb[28].mxu1 %v1267_v50 }
 0x846   : > { %v1313_v52 = vpop.f32.mrb[28].mxu0  ;;  %v1354_v54 = vpop.f32.mrb[28].mxu1 }
 0x847   : > { %v1314_v55 = vadd.f32 %v1313_v52, %v2294_v31  ;;  %v1315_v56 = vpop.f32.mrb[29].mxu0  ;;  %v1890_v57 = vpop.f32.mrb[29].mxu1  ;;  %v1355_v30 = vadd.f32 %v1354_v54, %v2300_v53 }
 0x848   : > { %v1317_v59 = vpop.f32.mrb[30].mxu0  ;;  %v1357_v58 = vpop.f32.mrb[30].mxu1  ;;  %v1316_v25 = vadd.f32 %v1315_v56, %v2297_v39 }
 0x849   : > { %v1360_v60 = vadd.f32 %v1647_v51, %v1314_v55  ;;  %v1318_v61 = vpop.f32.mrb[31].mxu0  ;;  %v1891_v62 = vpop.f32.mrb[31].mxu1 }
 0x84a   : > { %v1367_v28 = vadd.f32 %v1648_v27, %v1316_v25 }
 0x84b   : > { %v1650_v63 = vmul.f32 -1.442695, %v1360_v60 }
 0x84c   : > { %v1651_v2 = vmul.f32 -1.442695, %v1367_v28 }
 0x84d   : > { %2024 = vpow2.f32 %v1650_v63 }
 0x84e   : > { %2026 = vpow2.f32 %v1651_v2 }
 0x857   : > { %v2025_v1 = vpop.eup %2024 }
 0x858   : > { %v1364_v29 = vadd.f32 1.0, %v2025_v1  ;;  %v2027_v31 = vpop.eup %2026 }
 0x859   : > { %v1371_v36 = vadd.f32 1.0, %v2027_v31 }
 0x85a   : > { %2028 = vrcp.f32 %v1364_v29 }
 0x864   : > { %v2029_v32 = vpop.eup %2028 }
 0x865   : > { %v1374_v34 = vmul.f32 %v2029_v32, %v1355_v30 }
 0x867   : > { %v1375_v35 = vadd.f32 %v1649_v33, %v1374_v34 }
 0x869   : > { %2030 = vtanh.f32 %v1375_v35 }
 0x86a   : > { %2032 = vrcp.f32 %v1371_v36 }
 0x873   : > { %v2031_v39 = vpop.eup %2030 }
 0x874   : > { %v1377_v37 = vsub.f32 %v1266_v49, %v2031_v39  ;;  %v2033_v38 = vpop.eup %2032 }
 0x876   : > { %v1378_v40 = vmul.f32 %v2033_v38, %v1377_v37 }
 0x878   : > { %v1379_v41 = vadd.f32 %v2031_v39, %v1378_v40 }
 0x87a   : > { %v1380_v42 = vpack.c.bf16 %v1379_v41, %v1379_v41 }
 0x87c   : > { %1653 = vst [vmem:[%s1514_s19 + $0x1c] sm:$0xf] %v1380_v42 }
 0x87d PF: > { %s13_s14 = sadd.s32 1, %s2079_s14   ;;  %s2614_s12 = smov %s2075_s13 }
 0x87e   : > { %p10_p5 = scmp.ge.s32.totalorder %s13_s14, 4   ;;  %s2615_s13 = smov %s2617_s15 }
 0x880   :  { %12 = sbr.rel (!%p10_p5) target bundleno = 2 (0x2), region = 88 }

// kernel: gru_encoder_forward.5
= control target key start
LH: loop header
LB: loop body
LE: loop exit
PB: predicated region body
PF: predicated region fallthrough
CT: control target
= control target key end

     0   :  { %s639_s3 = inlined_call_operand.vmem [shape: bf16[128,128], index: 3, kind: input, shape index: {}]   ;;  %s640_s2 = inlined_call_operand.vmem [shape: bf16[128,128], index: 2, kind: input, shape index: {}]   ;;  %s641_s1 = inlined_call_operand.vmem [shape: bf16[2,64,128], index: 1, kind: input, shape index: {}, may-alias: {0,1}]   ;;  %s642_s0 = inlined_call_operand.vmem [shape: bf16[2,64,128], index: 0, kind: input, shape index: {}, may-alias: {0,1}]   ;;  %s643_s4 = inlined_call_operand.vmem [shape: f32[1,128], index: 4, kind: input, shape index: {}]   ;;  %s644_s5 = inlined_call_operand.vmem [shape: f32[64,128], index: 5, kind: output, shape index: {}]  }
   0x1   :  { %v486_v0 = vld [vmem:[%s639_s3] sm:$0xff]   ;;  %v488_v2 = vld [vmem:[%s639_s3 + $0x8] sm:$0xff]   ;;  %v490_v4 = vld [vmem:[%s639_s3 + $0x10] sm:$0xff]  }
   0x2   :  { %v487_v1 = vld [vmem:[%s640_s2] sm:$0xff]   ;;  %430 = vmatprep.subr.bf16.mxu1 %v486_v0  ;;  %v489_v3 = vld [vmem:[%s640_s2 + $0x8] sm:$0xff]   ;;  %v491_v5 = vld [vmem:[%s640_s2 + $0x10] sm:$0xff]  }
   0x3   :  { %454 = vmatprep.subr.bf16.mxu0 %v487_v1  ;;  %431 = vmatpush3.bf16.msra.mxu1 %v486_v0  ;;  %v492_v6 = vld [vmem:[%s639_s3 + $0x18] sm:$0xff]   ;;  %v494_v8 = vld [vmem:[%s639_s3 + $0x20] sm:$0xff]   ;;  %v496_v10 = vld [vmem:[%s639_s3 + $0x28] sm:$0xff]  }
   0x4   :  { %455 = vmatpush3.bf16.msra.mxu0 %v487_v1  ;;  %432 = vmatprep.subr.bf16.mxu1 %v488_v2  ;;  %v493_v7 = vld [vmem:[%s640_s2 + $0x18] sm:$0xff]   ;;  %v495_v9 = vld [vmem:[%s640_s2 + $0x20] sm:$0xff]   ;;  %v497_v11 = vld [vmem:[%s640_s2 + $0x28] sm:$0xff]  }
   0x5   :  { %456 = vmatprep.subr.bf16.mxu0 %v489_v3  ;;  %v502_v12 = vld [vmem:[%s641_s1 + $0x20] sm:$0xff]   ;;  %v498_v14 = vld [vmem:[%s639_s3 + $0x30] sm:$0xff]   ;;  %v500_v16 = vld [vmem:[%s639_s3 + $0x38] sm:$0xff]  }
   0x6   :  { %v503_v13 = vld [vmem:[%s642_s0] sm:$0xff]   ;;  %446 = vmatprep.mubr.bf16.mxu1 %v502_v12  ;;  %v499_v15 = vld [vmem:[%s640_s2 + $0x30] sm:$0xff]   ;;  %v501_v17 = vld [vmem:[%s640_s2 + $0x38] sm:$0xff]  }
   0x7   :  { %433 = vmatpush3.bf16.msra.mxu1 %v488_v2  ;;  %470 = vmatprep.mubr.bf16.mxu0 %v503_v13  ;;  %v504_v18 = vld [vmem:[%s641_s1 + $0x28] sm:$0xff]   ;;  %v506_v20 = vld [vmem:[%s641_s1 + $0x30] sm:$0xff]   ;;  %v508_v22 = vld [vmem:[%s641_s1 + $0x38] sm:$0xff]  }
   0x8   :  { %457 = vmatpush3.bf16.msra.mxu0 %v489_v3  ;;  %434 = vmatprep.subr.bf16.mxu1 %v490_v4  ;;  %v505_v19 = vld [vmem:[%s642_s0 + $0x8] sm:$0xff]   ;;  %v507_v21 = vld [vmem:[%s642_s0 + $0x10] sm:$0xff]   ;;  %v509_v23 = vld [vmem:[%s642_s0 + $0x18] sm:$0xff]  }
   0x9   :  { %458 = vmatprep.subr.bf16.mxu0 %v491_v5  ;;  %v405_v26 = vld [vmem:[%s643_s4] ss:$0 sm:$0xff] }
   0xb   :  { %435 = vmatpush3.bf16.msra.mxu1 %v490_v4 }
   0xc   :  { %459 = vmatpush3.bf16.msra.mxu0 %v491_v5  ;;  %436 = vmatprep.subr.bf16.mxu1 %v492_v6 }
   0xd   :  { %460 = vmatprep.subr.bf16.mxu0 %v493_v7 }
   0xf   :  { %437 = vmatpush3.bf16.msra.mxu1 %v492_v6 }
  0x10   :  { %461 = vmatpush3.bf16.msra.mxu0 %v493_v7  ;;  %438 = vmatprep.subr.bf16.mxu1 %v494_v8 }
  0x11   :  { %462 = vmatprep.subr.bf16.mxu0 %v495_v9 }
  0x13   :  { %439 = vmatpush3.bf16.msra.mxu1 %v494_v8 }
  0x14   :  { %463 = vmatpush3.bf16.msra.mxu0 %v495_v9  ;;  %440 = vmatprep.subr.bf16.mxu1 %v496_v10 }
  0x15   :  { %464 = vmatprep.subr.bf16.mxu0 %v497_v11 }
  0x17   :  { %441 = vmatpush3.bf16.msra.mxu1 %v496_v10 }
  0x18   :  { %465 = vmatpush3.bf16.msra.mxu0 %v497_v11  ;;  %442 = vmatprep.subr.bf16.mxu1 %v498_v14 }
  0x19   :  { %466 = vmatprep.subr.bf16.mxu0 %v499_v15 }
  0x1b   :  { %443 = vmatpush3.bf16.msra.mxu1 %v498_v14 }
  0x1c   :  { %467 = vmatpush3.bf16.msra.mxu0 %v499_v15  ;;  %444 = vmatprep.subr.bf16.mxu1 %v500_v16 }
  0x1d   :  { %468 = vmatprep.subr.bf16.mxu0 %v501_v17 }
  0x1f   :  { %445 = vmatpush3.bf16.msra.mxu1 %v500_v16 }
  0x20   :  { %469 = vmatpush3.bf16.msra.mxu0 %v501_v17 }
  0x22   :  { %447 = vmatmul.mubr.bf16.vlgmr.msra.gmra.mrb[0].mxu1 %v504_v18 }
  0x23   :  { %471 = vmatmul.mubr.bf16.vlgmr.msra.gmra.mrb[0].mxu0 %v505_v19  ;;  %450 = vmatprep.mubr.bf16.mxu1 %v506_v20 }
  0x24   :  { %474 = vmatprep.mubr.bf16.mxu0 %v507_v21 }
  0x2a   :  { %451 = vmatmul.mubr.bf16.gmra.mrb[4].mxu1 %v508_v22 }
  0x2b   :  { %475 = vmatmul.mubr.bf16.gmra.mrb[4].mxu0 %v509_v23 }
  0xf5   :  { %v448_v24 = vpop.f32.mrb[0].mxu1 }
  0xf6   :  { %v472_v25 = vpop.f32.mrb[0].mxu0  ;;  %v178_v27 = vpop.f32.mrb[1].mxu1 }
  0xf7   :  { %v324_v28 = vadd.f32 %v472_v25, %v448_v24  ;;  %v315_v29 = vpop.f32.mrb[1].mxu0  ;;  %v449_v30 = vpop.f32.mrb[2].mxu1 }
  0xf8   :  { %v316_v31 = vadd.f32 %v315_v29, %v178_v27  ;;  %v473_v32 = vpop.f32.mrb[2].mxu0  ;;  %v181_v33 = vpop.f32.mrb[3].mxu1 }
  0xf9   :  { %v355_v34 = vadd.f32 %v405_v26, %v324_v28  ;;  %v327_v35 = vadd.f32 %v473_v32, %v449_v30  ;;  %v318_v36 = vpop.f32.mrb[3].mxu0 }
  0xfa   :  { %v353_v37 = vadd.f32 %v405_v26, %v316_v31  ;;  %v319_v38 = vadd.f32 %v318_v36, %v181_v33 }
  0xfb   :  { %363 = vst [vmem:[%s644_s5 + $0x10] sm:$0xff] %v355_v34  ;;  %v356_v39 = vadd.f32 %v405_v26, %v327_v35 }
  0xfc   :  { %361 = vst [vmem:[%s644_s5] sm:$0xff] %v353_v37  ;;  %v354_v40 = vadd.f32 %v405_v26, %v319_v38 }
  0xfd   :  { %364 = vst [vmem:[%s644_s5 + $0x18] sm:$0xff] %v356_v39  ;;  %v452_v41 = vpop.f32.mrb[4].mxu1 }
  0xfe   :  { %362 = vst [vmem:[%s644_s5 + $0x8] sm:$0xff] %v354_v40  ;;  %v476_v42 = vpop.f32.mrb[4].mxu0  ;;  %v194_v43 = vpop.f32.mrb[5].mxu1 }
  0xff   :  { %v340_v44 = vadd.f32 %v476_v42, %v452_v41  ;;  %v331_v45 = vpop.f32.mrb[5].mxu0  ;;  %v453_v46 = vpop.f32.mrb[6].mxu1 }
 0x100   :  { %v332_v47 = vadd.f32 %v331_v45, %v194_v43  ;;  %v477_v48 = vpop.f32.mrb[6].mxu0  ;;  %v197_v49 = vpop.f32.mrb[7].mxu1 }
 0x101   :  { %v359_v50 = vadd.f32 %v405_v26, %v340_v44  ;;  %v343_v51 = vadd.f32 %v477_v48, %v453_v46  ;;  %v334_v52 = vpop.f32.mrb[7].mxu0 }
 0x102   :  { %v357_v53 = vadd.f32 %v405_v26, %v332_v47  ;;  %v335_v54 = vadd.f32 %v334_v52, %v197_v49 }
 0x103   :  { %367 = vst [vmem:[%s644_s5 + $0x30] sm:$0xff] %v359_v50  ;;  %v360_v55 = vadd.f32 %v405_v26, %v343_v51 }
 0x104   :  { %365 = vst [vmem:[%s644_s5 + $0x20] sm:$0xff] %v357_v53  ;;  %v358_v56 = vadd.f32 %v405_v26, %v335_v54 }
 0x105   :  { %368 = vst [vmem:[%s644_s5 + $0x38] sm:$0xff] %v360_v55 }
 0x106   :  { %366 = vst [vmem:[%s644_s5 + $0x28] sm:$0xff] %v358_v56 }

</bundles_post_ra>
